<compile_context>
chip_gen: v7x
topology: tpu7x:2x2x1
jax: 0.10.0
libtpu: 0.0.40
codegen_flags: <defaults>
</compile_context>

<pallas_src>
import jax
import jax.numpy as jnp
from jax.experimental import pallas as pl
from jax.experimental.pallas import tpu as pltpu

HIDDEN = 10
LANES = 128


def mlp_sin_kernel(x_ref, w1_ref, b1_ref, w2_ref, b2_ref, w3_ref, b3_ref, o_ref):
    """One (tile_rows, 128) batch tile through fc1-ReLU-fc2-ReLU-fc3.

    x_ref / o_ref : (tile_rows, 128) f32 in VMEM.
    w1 (10,), b1 (10,), w2 (10,10), b2 (10,), w3 (10,), b3 (1,) : f32 in SMEM.
    """
    x = x_ref[...]  # load the whole tile once (hoisted)

    # fc1 (in_features = 1): h1_j = relu(w1[j] * x + b1[j])  -- scalar splat FMA on VPU.
    h1 = [jnp.maximum(w1_ref[j] * x + b1_ref[j], 0.0) for j in range(HIDDEN)]

    # fc2 (10 x 10): fully unrolled scalar*vector FMAs (no jnp.dot with K<=10).
    h2 = []
    for j in range(HIDDEN):
        acc = w2_ref[j, 0] * h1[0]
        for k in range(1, HIDDEN):
            acc = acc + w2_ref[j, k] * h1[k]
        h2.append(jnp.maximum(acc + b2_ref[j], 0.0))

    # fc3 (out_features = 1): 10-term weighted sum on VPU.
    y = w3_ref[0] * h2[0]
    for k in range(1, HIDDEN):
        y = y + w3_ref[k] * h2[k]
    o_ref[...] = (y + b3_ref[0]).astype(o_ref.dtype)


def nn_sin_forward(x, params, *, max_tile_rows=256):
    """x: (N, 1) float32 (PyTorch Linear convention). Returns (N, 1) float32."""
    N = x.shape[0]
    rows = pl.cdiv(N, LANES)                       # 128-lane rows covering the batch
    # Aim for >= 2 grid steps when there is enough work (v7x megacore) while
    # keeping tiles large; the block sublane dim must be a multiple of 8.
    half_rows = (rows + 1) // 2
    tile_rows = min(max_tile_rows, max(8, ((half_rows + 7) // 8) * 8))
    grid_m = pl.cdiv(rows, tile_rows)
    rows_pad = grid_m * tile_rows                  # no partial blocks -> unmasked stores
    n_pad = rows_pad * LANES

    x_flat = jnp.pad(x.reshape(-1).astype(jnp.float32), (0, n_pad - N))
    x2d = x_flat.reshape(rows_pad, LANES)          # batch on (sublane, lane): dense vregs

    w1 = params["fc1_w"].reshape(HIDDEN).astype(jnp.float32)
    b1 = params["fc1_b"].reshape(HIDDEN).astype(jnp.float32)
    w2 = params["fc2_w"].astype(jnp.float32)       # (10, 10), [out, in] like PyTorch
    b2 = params["fc2_b"].reshape(HIDDEN).astype(jnp.float32)
    w3 = params["fc3_w"].reshape(HIDDEN).astype(jnp.float32)
    b3 = params["fc3_b"].reshape(1).astype(jnp.float32)

    smem = pl.BlockSpec(memory_space=pltpu.MemorySpace.SMEM)
    out2d = pl.pallas_call(
        mlp_sin_kernel,
        out_shape=jax.ShapeDtypeStruct((rows_pad, LANES), jnp.float32),
        grid_spec=pltpu.PrefetchScalarGridSpec(
            num_scalar_prefetch=0,
            grid=(grid_m,),
            in_specs=[
                # 128 KiB max per buffer; if a bundle dump on v6e shows exposed
                # DMA, bump depth with pipeline_mode=pl.Buffered(3) here.
                pl.BlockSpec((tile_rows, LANES), lambda i: (i, 0)),
                smem, smem, smem, smem, smem, smem,   # tiny weights/biases -> SMEM
            ],
            out_specs=pl.BlockSpec((tile_rows, LANES), lambda i: (i, 0)),
        ),
        compiler_params=pltpu.CompilerParams(
            dimension_semantics=("parallel",)),      # shard batch tiles across TCs
    )(x2d, w1, b1, w2, b2, w3, b3)

    return out2d.reshape(-1)[:N].reshape(N, 1)


def init_params(key):
    """Deterministic init; weights in PyTorch nn.Linear layout (out, in) / (out,)."""
    k1, k2, k3, k4, k5, k6 = jax.random.split(key, 6)
    return {
        "fc1_w": jax.random.normal(k1, (HIDDEN, 1), jnp.float32) * 0.5,
        "fc1_b": jax.random.normal(k2, (HIDDEN,), jnp.float32) * 0.1,
        "fc2_w": jax.random.normal(k3, (HIDDEN, HIDDEN), jnp.float32) * 0.3,
        "fc2_b": jax.random.normal(k4, (HIDDEN,), jnp.float32) * 0.1,
        "fc3_w": jax.random.normal(k5, (1, HIDDEN), jnp.float32) * 0.3,
        "fc3_b": jax.random.normal(k6, (1,), jnp.float32) * 0.1,
    }


def reference_forward(x, p):
    h = jnp.maximum(x @ p["fc1_w"].T + p["fc1_b"], 0.0)
    h = jnp.maximum(h @ p["fc2_w"].T + p["fc2_b"], 0.0)
    return h @ p["fc3_w"].T + p["fc3_b"]


if __name__ == "__main__":
    key = jax.random.PRNGKey(0)
    kx, kp = jax.random.split(key)
    params = init_params(kp)

    # N=6144 -> 48 lane-rows -> 2 parallel grid steps of (24, 128) tiles (v7x megacore).
    # N=777 and N=5 exercise the padding / ragged-batch path.
    for n in (6144, 777, 5):
        x = jax.random.normal(jax.random.fold_in(kx, n), (n, 1), jnp.float32)
        y = jax.block_until_ready(nn_sin_forward(x, params))
        y_ref = reference_forward(x, params)
        assert y.shape == (n, 1), (y.shape, n)
        assert jnp.allclose(y, y_ref, atol=1e-5, rtol=1e-5), f"mismatch vs reference at N={n}"

    print("KERNEL_OK")
</pallas_src>

<mosaic_0001>
module attributes {stable_mosaic.version = 11 : i64} {
  func.func @mlp_sin_kernel(%arg0: i32, %arg1: memref<24x128xf32, #tpu.memory_space<vmem>>, %arg2: memref<10xf32, #tpu.memory_space<smem>>, %arg3: memref<10xf32, #tpu.memory_space<smem>>, %arg4: memref<10x10xf32, #tpu.memory_space<smem>>, %arg5: memref<10xf32, #tpu.memory_space<smem>>, %arg6: memref<10xf32, #tpu.memory_space<smem>>, %arg7: memref<1xf32, #tpu.memory_space<smem>>, %arg8: memref<24x128xf32, #tpu.memory_space<vmem>>) attributes {dimension_semantics = [#tpu.dimension_semantics<parallel>], iteration_bounds = array<i64: 2>, scalar_prefetch = 0 : i64, scratch_operands = 0 : i64, tpu.core_type = #tpu.core_type<tc>, window_params = [{transform_indices = @transform_0, window_bounds = array<i64: 24, 128>}, {transform_indices = @transform_1, window_bounds = array<i64: 10>}, {transform_indices = @transform_2, window_bounds = array<i64: 10>}, {transform_indices = @transform_3, window_bounds = array<i64: 10, 10>}, {transform_indices = @transform_4, window_bounds = array<i64: 10>}, {transform_indices = @transform_5, window_bounds = array<i64: 10>}, {transform_indices = @transform_6, window_bounds = array<i64: 1>}, {transform_indices = @transform_7, window_bounds = array<i64: 24, 128>}]} {
    %c0 = arith.constant 0 : index
    %c0_0 = arith.constant 0 : index
    %0 = vector.load %arg1[%c0, %c0_0] : memref<24x128xf32, #tpu.memory_space<vmem>>, vector<24x128xf32>
    %c0_1 = arith.constant 0 : index
    %1 = memref.load %arg2[%c0_1] : memref<10xf32, #tpu.memory_space<smem>>
    %2 = vector.broadcast %1 : f32 to vector<24x128xf32>
    %3 = arith.mulf %2, %0 : vector<24x128xf32>
    %c0_2 = arith.constant 0 : index
    %4 = memref.load %arg3[%c0_2] : memref<10xf32, #tpu.memory_space<smem>>
    %5 = vector.broadcast %4 : f32 to vector<24x128xf32>
    %6 = arith.addf %3, %5 : vector<24x128xf32>
    %cst = arith.constant 0.000000e+00 : f32
    %7 = vector.broadcast %cst : f32 to vector<24x128xf32>
    %8 = arith.maximumf %6, %7 : vector<24x128xf32>
    %c1 = arith.constant 1 : index
    %9 = memref.load %arg2[%c1] : memref<10xf32, #tpu.memory_space<smem>>
    %10 = vector.broadcast %9 : f32 to vector<24x128xf32>
    %11 = arith.mulf %10, %0 : vector<24x128xf32>
    %c1_3 = arith.constant 1 : index
    %12 = memref.load %arg3[%c1_3] : memref<10xf32, #tpu.memory_space<smem>>
    %13 = vector.broadcast %12 : f32 to vector<24x128xf32>
    %14 = arith.addf %11, %13 : vector<24x128xf32>
    %cst_4 = arith.constant 0.000000e+00 : f32
    %15 = vector.broadcast %cst_4 : f32 to vector<24x128xf32>
    %16 = arith.maximumf %14, %15 : vector<24x128xf32>
    %c2 = arith.constant 2 : index
    %17 = memref.load %arg2[%c2] : memref<10xf32, #tpu.memory_space<smem>>
    %18 = vector.broadcast %17 : f32 to vector<24x128xf32>
    %19 = arith.mulf %18, %0 : vector<24x128xf32>
    %c2_5 = arith.constant 2 : index
    %20 = memref.load %arg3[%c2_5] : memref<10xf32, #tpu.memory_space<smem>>
    %21 = vector.broadcast %20 : f32 to vector<24x128xf32>
    %22 = arith.addf %19, %21 : vector<24x128xf32>
    %cst_6 = arith.constant 0.000000e+00 : f32
    %23 = vector.broadcast %cst_6 : f32 to vector<24x128xf32>
    %24 = arith.maximumf %22, %23 : vector<24x128xf32>
    %c3 = arith.constant 3 : index
    %25 = memref.load %arg2[%c3] : memref<10xf32, #tpu.memory_space<smem>>
    %26 = vector.broadcast %25 : f32 to vector<24x128xf32>
    %27 = arith.mulf %26, %0 : vector<24x128xf32>
    %c3_7 = arith.constant 3 : index
    %28 = memref.load %arg3[%c3_7] : memref<10xf32, #tpu.memory_space<smem>>
    %29 = vector.broadcast %28 : f32 to vector<24x128xf32>
    %30 = arith.addf %27, %29 : vector<24x128xf32>
    %cst_8 = arith.constant 0.000000e+00 : f32
    %31 = vector.broadcast %cst_8 : f32 to vector<24x128xf32>
    %32 = arith.maximumf %30, %31 : vector<24x128xf32>
    %c4 = arith.constant 4 : index
    %33 = memref.load %arg2[%c4] : memref<10xf32, #tpu.memory_space<smem>>
    %34 = vector.broadcast %33 : f32 to vector<24x128xf32>
    %35 = arith.mulf %34, %0 : vector<24x128xf32>
    %c4_9 = arith.constant 4 : index
    %36 = memref.load %arg3[%c4_9] : memref<10xf32, #tpu.memory_space<smem>>
    %37 = vector.broadcast %36 : f32 to vector<24x128xf32>
    %38 = arith.addf %35, %37 : vector<24x128xf32>
    %cst_10 = arith.constant 0.000000e+00 : f32
    %39 = vector.broadcast %cst_10 : f32 to vector<24x128xf32>
    %40 = arith.maximumf %38, %39 : vector<24x128xf32>
    %c5 = arith.constant 5 : index
    %41 = memref.load %arg2[%c5] : memref<10xf32, #tpu.memory_space<smem>>
    %42 = vector.broadcast %41 : f32 to vector<24x128xf32>
    %43 = arith.mulf %42, %0 : vector<24x128xf32>
    %c5_11 = arith.constant 5 : index
    %44 = memref.load %arg3[%c5_11] : memref<10xf32, #tpu.memory_space<smem>>
    %45 = vector.broadcast %44 : f32 to vector<24x128xf32>
    %46 = arith.addf %43, %45 : vector<24x128xf32>
    %cst_12 = arith.constant 0.000000e+00 : f32
    %47 = vector.broadcast %cst_12 : f32 to vector<24x128xf32>
    %48 = arith.maximumf %46, %47 : vector<24x128xf32>
    %c6 = arith.constant 6 : index
    %49 = memref.load %arg2[%c6] : memref<10xf32, #tpu.memory_space<smem>>
    %50 = vector.broadcast %49 : f32 to vector<24x128xf32>
    %51 = arith.mulf %50, %0 : vector<24x128xf32>
    %c6_13 = arith.constant 6 : index
    %52 = memref.load %arg3[%c6_13] : memref<10xf32, #tpu.memory_space<smem>>
    %53 = vector.broadcast %52 : f32 to vector<24x128xf32>
    %54 = arith.addf %51, %53 : vector<24x128xf32>
    %cst_14 = arith.constant 0.000000e+00 : f32
    %55 = vector.broadcast %cst_14 : f32 to vector<24x128xf32>
    %56 = arith.maximumf %54, %55 : vector<24x128xf32>
    %c7 = arith.constant 7 : index
    %57 = memref.load %arg2[%c7] : memref<10xf32, #tpu.memory_space<smem>>
    %58 = vector.broadcast %57 : f32 to vector<24x128xf32>
    %59 = arith.mulf %58, %0 : vector<24x128xf32>
    %c7_15 = arith.constant 7 : index
    %60 = memref.load %arg3[%c7_15] : memref<10xf32, #tpu.memory_space<smem>>
    %61 = vector.broadcast %60 : f32 to vector<24x128xf32>
    %62 = arith.addf %59, %61 : vector<24x128xf32>
    %cst_16 = arith.constant 0.000000e+00 : f32
    %63 = vector.broadcast %cst_16 : f32 to vector<24x128xf32>
    %64 = arith.maximumf %62, %63 : vector<24x128xf32>
    %c8 = arith.constant 8 : index
    %65 = memref.load %arg2[%c8] : memref<10xf32, #tpu.memory_space<smem>>
    %66 = vector.broadcast %65 : f32 to vector<24x128xf32>
    %67 = arith.mulf %66, %0 : vector<24x128xf32>
    %c8_17 = arith.constant 8 : index
    %68 = memref.load %arg3[%c8_17] : memref<10xf32, #tpu.memory_space<smem>>
    %69 = vector.broadcast %68 : f32 to vector<24x128xf32>
    %70 = arith.addf %67, %69 : vector<24x128xf32>
    %cst_18 = arith.constant 0.000000e+00 : f32
    %71 = vector.broadcast %cst_18 : f32 to vector<24x128xf32>
    %72 = arith.maximumf %70, %71 : vector<24x128xf32>
    %c9 = arith.constant 9 : index
    %73 = memref.load %arg2[%c9] : memref<10xf32, #tpu.memory_space<smem>>
    %74 = vector.broadcast %73 : f32 to vector<24x128xf32>
    %75 = arith.mulf %74, %0 : vector<24x128xf32>
    %c9_19 = arith.constant 9 : index
    %76 = memref.load %arg3[%c9_19] : memref<10xf32, #tpu.memory_space<smem>>
    %77 = vector.broadcast %76 : f32 to vector<24x128xf32>
    %78 = arith.addf %75, %77 : vector<24x128xf32>
    %cst_20 = arith.constant 0.000000e+00 : f32
    %79 = vector.broadcast %cst_20 : f32 to vector<24x128xf32>
    %80 = arith.maximumf %78, %79 : vector<24x128xf32>
    %c0_21 = arith.constant 0 : index
    %c0_22 = arith.constant 0 : index
    %81 = memref.load %arg4[%c0_21, %c0_22] : memref<10x10xf32, #tpu.memory_space<smem>>
    %82 = vector.broadcast %81 : f32 to vector<24x128xf32>
    %83 = arith.mulf %82, %8 : vector<24x128xf32>
    %c0_23 = arith.constant 0 : index
    %c1_24 = arith.constant 1 : index
    %84 = memref.load %arg4[%c0_23, %c1_24] : memref<10x10xf32, #tpu.memory_space<smem>>
    %85 = vector.broadcast %84 : f32 to vector<24x128xf32>
    %86 = arith.mulf %85, %16 : vector<24x128xf32>
    %87 = arith.addf %83, %86 : vector<24x128xf32>
    %c0_25 = arith.constant 0 : index
    %c2_26 = arith.constant 2 : index
    %88 = memref.load %arg4[%c0_25, %c2_26] : memref<10x10xf32, #tpu.memory_space<smem>>
    %89 = vector.broadcast %88 : f32 to vector<24x128xf32>
    %90 = arith.mulf %89, %24 : vector<24x128xf32>
    %91 = arith.addf %87, %90 : vector<24x128xf32>
    %c0_27 = arith.constant 0 : index
    %c3_28 = arith.constant 3 : index
    %92 = memref.load %arg4[%c0_27, %c3_28] : memref<10x10xf32, #tpu.memory_space<smem>>
    %93 = vector.broadcast %92 : f32 to vector<24x128xf32>
    %94 = arith.mulf %93, %32 : vector<24x128xf32>
    %95 = arith.addf %91, %94 : vector<24x128xf32>
    %c0_29 = arith.constant 0 : index
    %c4_30 = arith.constant 4 : index
    %96 = memref.load %arg4[%c0_29, %c4_30] : memref<10x10xf32, #tpu.memory_space<smem>>
    %97 = vector.broadcast %96 : f32 to vector<24x128xf32>
    %98 = arith.mulf %97, %40 : vector<24x128xf32>
    %99 = arith.addf %95, %98 : vector<24x128xf32>
    %c0_31 = arith.constant 0 : index
    %c5_32 = arith.constant 5 : index
    %100 = memref.load %arg4[%c0_31, %c5_32] : memref<10x10xf32, #tpu.memory_space<smem>>
    %101 = vector.broadcast %100 : f32 to vector<24x128xf32>
    %102 = arith.mulf %101, %48 : vector<24x128xf32>
    %103 = arith.addf %99, %102 : vector<24x128xf32>
    %c0_33 = arith.constant 0 : index
    %c6_34 = arith.constant 6 : index
    %104 = memref.load %arg4[%c0_33, %c6_34] : memref<10x10xf32, #tpu.memory_space<smem>>
    %105 = vector.broadcast %104 : f32 to vector<24x128xf32>
    %106 = arith.mulf %105, %56 : vector<24x128xf32>
    %107 = arith.addf %103, %106 : vector<24x128xf32>
    %c0_35 = arith.constant 0 : index
    %c7_36 = arith.constant 7 : index
    %108 = memref.load %arg4[%c0_35, %c7_36] : memref<10x10xf32, #tpu.memory_space<smem>>
    %109 = vector.broadcast %108 : f32 to vector<24x128xf32>
    %110 = arith.mulf %109, %64 : vector<24x128xf32>
    %111 = arith.addf %107, %110 : vector<24x128xf32>
    %c0_37 = arith.constant 0 : index
    %c8_38 = arith.constant 8 : index
    %112 = memref.load %arg4[%c0_37, %c8_38] : memref<10x10xf32, #tpu.memory_space<smem>>
    %113 = vector.broadcast %112 : f32 to vector<24x128xf32>
    %114 = arith.mulf %113, %72 : vector<24x128xf32>
    %115 = arith.addf %111, %114 : vector<24x128xf32>
    %c0_39 = arith.constant 0 : index
    %c9_40 = arith.constant 9 : index
    %116 = memref.load %arg4[%c0_39, %c9_40] : memref<10x10xf32, #tpu.memory_space<smem>>
    %117 = vector.broadcast %116 : f32 to vector<24x128xf32>
    %118 = arith.mulf %117, %80 : vector<24x128xf32>
    %119 = arith.addf %115, %118 : vector<24x128xf32>
    %c0_41 = arith.constant 0 : index
    %120 = memref.load %arg5[%c0_41] : memref<10xf32, #tpu.memory_space<smem>>
    %121 = vector.broadcast %120 : f32 to vector<24x128xf32>
    %122 = arith.addf %119, %121 : vector<24x128xf32>
    %cst_42 = arith.constant 0.000000e+00 : f32
    %123 = vector.broadcast %cst_42 : f32 to vector<24x128xf32>
    %124 = arith.maximumf %122, %123 : vector<24x128xf32>
    %c1_43 = arith.constant 1 : index
    %c0_44 = arith.constant 0 : index
    %125 = memref.load %arg4[%c1_43, %c0_44] : memref<10x10xf32, #tpu.memory_space<smem>>
    %126 = vector.broadcast %125 : f32 to vector<24x128xf32>
    %127 = arith.mulf %126, %8 : vector<24x128xf32>
    %c1_45 = arith.constant 1 : index
    %c1_46 = arith.constant 1 : index
    %128 = memref.load %arg4[%c1_45, %c1_46] : memref<10x10xf32, #tpu.memory_space<smem>>
    %129 = vector.broadcast %128 : f32 to vector<24x128xf32>
    %130 = arith.mulf %129, %16 : vector<24x128xf32>
    %131 = arith.addf %127, %130 : vector<24x128xf32>
    %c1_47 = arith.constant 1 : index
    %c2_48 = arith.constant 2 : index
    %132 = memref.load %arg4[%c1_47, %c2_48] : memref<10x10xf32, #tpu.memory_space<smem>>
    %133 = vector.broadcast %132 : f32 to vector<24x128xf32>
    %134 = arith.mulf %133, %24 : vector<24x128xf32>
    %135 = arith.addf %131, %134 : vector<24x128xf32>
    %c1_49 = arith.constant 1 : index
    %c3_50 = arith.constant 3 : index
    %136 = memref.load %arg4[%c1_49, %c3_50] : memref<10x10xf32, #tpu.memory_space<smem>>
    %137 = vector.broadcast %136 : f32 to vector<24x128xf32>
    %138 = arith.mulf %137, %32 : vector<24x128xf32>
    %139 = arith.addf %135, %138 : vector<24x128xf32>
    %c1_51 = arith.constant 1 : index
    %c4_52 = arith.constant 4 : index
    %140 = memref.load %arg4[%c1_51, %c4_52] : memref<10x10xf32, #tpu.memory_space<smem>>
    %141 = vector.broadcast %140 : f32 to vector<24x128xf32>
    %142 = arith.mulf %141, %40 : vector<24x128xf32>
    %143 = arith.addf %139, %142 : vector<24x128xf32>
    %c1_53 = arith.constant 1 : index
    %c5_54 = arith.constant 5 : index
    %144 = memref.load %arg4[%c1_53, %c5_54] : memref<10x10xf32, #tpu.memory_space<smem>>
    %145 = vector.broadcast %144 : f32 to vector<24x128xf32>
    %146 = arith.mulf %145, %48 : vector<24x128xf32>
    %147 = arith.addf %143, %146 : vector<24x128xf32>
    %c1_55 = arith.constant 1 : index
    %c6_56 = arith.constant 6 : index
    %148 = memref.load %arg4[%c1_55, %c6_56] : memref<10x10xf32, #tpu.memory_space<smem>>
    %149 = vector.broadcast %148 : f32 to vector<24x128xf32>
    %150 = arith.mulf %149, %56 : vector<24x128xf32>
    %151 = arith.addf %147, %150 : vector<24x128xf32>
    %c1_57 = arith.constant 1 : index
    %c7_58 = arith.constant 7 : index
    %152 = memref.load %arg4[%c1_57, %c7_58] : memref<10x10xf32, #tpu.memory_space<smem>>
    %153 = vector.broadcast %152 : f32 to vector<24x128xf32>
    %154 = arith.mulf %153, %64 : vector<24x128xf32>
    %155 = arith.addf %151, %154 : vector<24x128xf32>
    %c1_59 = arith.constant 1 : index
    %c8_60 = arith.constant 8 : index
    %156 = memref.load %arg4[%c1_59, %c8_60] : memref<10x10xf32, #tpu.memory_space<smem>>
    %157 = vector.broadcast %156 : f32 to vector<24x128xf32>
    %158 = arith.mulf %157, %72 : vector<24x128xf32>
    %159 = arith.addf %155, %158 : vector<24x128xf32>
    %c1_61 = arith.constant 1 : index
    %c9_62 = arith.constant 9 : index
    %160 = memref.load %arg4[%c1_61, %c9_62] : memref<10x10xf32, #tpu.memory_space<smem>>
    %161 = vector.broadcast %160 : f32 to vector<24x128xf32>
    %162 = arith.mulf %161, %80 : vector<24x128xf32>
    %163 = arith.addf %159, %162 : vector<24x128xf32>
    %c1_63 = arith.constant 1 : index
    %164 = memref.load %arg5[%c1_63] : memref<10xf32, #tpu.memory_space<smem>>
    %165 = vector.broadcast %164 : f32 to vector<24x128xf32>
    %166 = arith.addf %163, %165 : vector<24x128xf32>
    %cst_64 = arith.constant 0.000000e+00 : f32
    %167 = vector.broadcast %cst_64 : f32 to vector<24x128xf32>
    %168 = arith.maximumf %166, %167 : vector<24x128xf32>
    %c2_65 = arith.constant 2 : index
    %c0_66 = arith.constant 0 : index
    %169 = memref.load %arg4[%c2_65, %c0_66] : memref<10x10xf32, #tpu.memory_space<smem>>
    %170 = vector.broadcast %169 : f32 to vector<24x128xf32>
    %171 = arith.mulf %170, %8 : vector<24x128xf32>
    %c2_67 = arith.constant 2 : index
    %c1_68 = arith.constant 1 : index
    %172 = memref.load %arg4[%c2_67, %c1_68] : memref<10x10xf32, #tpu.memory_space<smem>>
    %173 = vector.broadcast %172 : f32 to vector<24x128xf32>
    %174 = arith.mulf %173, %16 : vector<24x128xf32>
    %175 = arith.addf %171, %174 : vector<24x128xf32>
    %c2_69 = arith.constant 2 : index
    %c2_70 = arith.constant 2 : index
    %176 = memref.load %arg4[%c2_69, %c2_70] : memref<10x10xf32, #tpu.memory_space<smem>>
    %177 = vector.broadcast %176 : f32 to vector<24x128xf32>
    %178 = arith.mulf %177, %24 : vector<24x128xf32>
    %179 = arith.addf %175, %178 : vector<24x128xf32>
    %c2_71 = arith.constant 2 : index
    %c3_72 = arith.constant 3 : index
    %180 = memref.load %arg4[%c2_71, %c3_72] : memref<10x10xf32, #tpu.memory_space<smem>>
    %181 = vector.broadcast %180 : f32 to vector<24x128xf32>
    %182 = arith.mulf %181, %32 : vector<24x128xf32>
    %183 = arith.addf %179, %182 : vector<24x128xf32>
    %c2_73 = arith.constant 2 : index
    %c4_74 = arith.constant 4 : index
    %184 = memref.load %arg4[%c2_73, %c4_74] : memref<10x10xf32, #tpu.memory_space<smem>>
    %185 = vector.broadcast %184 : f32 to vector<24x128xf32>
    %186 = arith.mulf %185, %40 : vector<24x128xf32>
    %187 = arith.addf %183, %186 : vector<24x128xf32>
    %c2_75 = arith.constant 2 : index
    %c5_76 = arith.constant 5 : index
    %188 = memref.load %arg4[%c2_75, %c5_76] : memref<10x10xf32, #tpu.memory_space<smem>>
    %189 = vector.broadcast %188 : f32 to vector<24x128xf32>
    %190 = arith.mulf %189, %48 : vector<24x128xf32>
    %191 = arith.addf %187, %190 : vector<24x128xf32>
    %c2_77 = arith.constant 2 : index
    %c6_78 = arith.constant 6 : index
    %192 = memref.load %arg4[%c2_77, %c6_78] : memref<10x10xf32, #tpu.memory_space<smem>>
    %193 = vector.broadcast %192 : f32 to vector<24x128xf32>
    %194 = arith.mulf %193, %56 : vector<24x128xf32>
    %195 = arith.addf %191, %194 : vector<24x128xf32>
    %c2_79 = arith.constant 2 : index
    %c7_80 = arith.constant 7 : index
    %196 = memref.load %arg4[%c2_79, %c7_80] : memref<10x10xf32, #tpu.memory_space<smem>>
    %197 = vector.broadcast %196 : f32 to vector<24x128xf32>
    %198 = arith.mulf %197, %64 : vector<24x128xf32>
    %199 = arith.addf %195, %198 : vector<24x128xf32>
    %c2_81 = arith.constant 2 : index
    %c8_82 = arith.constant 8 : index
    %200 = memref.load %arg4[%c2_81, %c8_82] : memref<10x10xf32, #tpu.memory_space<smem>>
    %201 = vector.broadcast %200 : f32 to vector<24x128xf32>
    %202 = arith.mulf %201, %72 : vector<24x128xf32>
    %203 = arith.addf %199, %202 : vector<24x128xf32>
    %c2_83 = arith.constant 2 : index
    %c9_84 = arith.constant 9 : index
    %204 = memref.load %arg4[%c2_83, %c9_84] : memref<10x10xf32, #tpu.memory_space<smem>>
    %205 = vector.broadcast %204 : f32 to vector<24x128xf32>
    %206 = arith.mulf %205, %80 : vector<24x128xf32>
    %207 = arith.addf %203, %206 : vector<24x128xf32>
    %c2_85 = arith.constant 2 : index
    %208 = memref.load %arg5[%c2_85] : memref<10xf32, #tpu.memory_space<smem>>
    %209 = vector.broadcast %208 : f32 to vector<24x128xf32>
    %210 = arith.addf %207, %209 : vector<24x128xf32>
    %cst_86 = arith.constant 0.000000e+00 : f32
    %211 = vector.broadcast %cst_86 : f32 to vector<24x128xf32>
    %212 = arith.maximumf %210, %211 : vector<24x128xf32>
    %c3_87 = arith.constant 3 : index
    %c0_88 = arith.constant 0 : index
    %213 = memref.load %arg4[%c3_87, %c0_88] : memref<10x10xf32, #tpu.memory_space<smem>>
    %214 = vector.broadcast %213 : f32 to vector<24x128xf32>
    %215 = arith.mulf %214, %8 : vector<24x128xf32>
    %c3_89 = arith.constant 3 : index
    %c1_90 = arith.constant 1 : index
    %216 = memref.load %arg4[%c3_89, %c1_90] : memref<10x10xf32, #tpu.memory_space<smem>>
    %217 = vector.broadcast %216 : f32 to vector<24x128xf32>
    %218 = arith.mulf %217, %16 : vector<24x128xf32>
    %219 = arith.addf %215, %218 : vector<24x128xf32>
    %c3_91 = arith.constant 3 : index
    %c2_92 = arith.constant 2 : index
    %220 = memref.load %arg4[%c3_91, %c2_92] : memref<10x10xf32, #tpu.memory_space<smem>>
    %221 = vector.broadcast %220 : f32 to vector<24x128xf32>
    %222 = arith.mulf %221, %24 : vector<24x128xf32>
    %223 = arith.addf %219, %222 : vector<24x128xf32>
    %c3_93 = arith.constant 3 : index
    %c3_94 = arith.constant 3 : index
    %224 = memref.load %arg4[%c3_93, %c3_94] : memref<10x10xf32, #tpu.memory_space<smem>>
    %225 = vector.broadcast %224 : f32 to vector<24x128xf32>
    %226 = arith.mulf %225, %32 : vector<24x128xf32>
    %227 = arith.addf %223, %226 : vector<24x128xf32>
    %c3_95 = arith.constant 3 : index
    %c4_96 = arith.constant 4 : index
    %228 = memref.load %arg4[%c3_95, %c4_96] : memref<10x10xf32, #tpu.memory_space<smem>>
    %229 = vector.broadcast %228 : f32 to vector<24x128xf32>
    %230 = arith.mulf %229, %40 : vector<24x128xf32>
    %231 = arith.addf %227, %230 : vector<24x128xf32>
    %c3_97 = arith.constant 3 : index
    %c5_98 = arith.constant 5 : index
    %232 = memref.load %arg4[%c3_97, %c5_98] : memref<10x10xf32, #tpu.memory_space<smem>>
    %233 = vector.broadcast %232 : f32 to vector<24x128xf32>
    %234 = arith.mulf %233, %48 : vector<24x128xf32>
    %235 = arith.addf %231, %234 : vector<24x128xf32>
    %c3_99 = arith.constant 3 : index
    %c6_100 = arith.constant 6 : index
    %236 = memref.load %arg4[%c3_99, %c6_100] : memref<10x10xf32, #tpu.memory_space<smem>>
    %237 = vector.broadcast %236 : f32 to vector<24x128xf32>
    %238 = arith.mulf %237, %56 : vector<24x128xf32>
    %239 = arith.addf %235, %238 : vector<24x128xf32>
    %c3_101 = arith.constant 3 : index
    %c7_102 = arith.constant 7 : index
    %240 = memref.load %arg4[%c3_101, %c7_102] : memref<10x10xf32, #tpu.memory_space<smem>>
    %241 = vector.broadcast %240 : f32 to vector<24x128xf32>
    %242 = arith.mulf %241, %64 : vector<24x128xf32>
    %243 = arith.addf %239, %242 : vector<24x128xf32>
    %c3_103 = arith.constant 3 : index
    %c8_104 = arith.constant 8 : index
    %244 = memref.load %arg4[%c3_103, %c8_104] : memref<10x10xf32, #tpu.memory_space<smem>>
    %245 = vector.broadcast %244 : f32 to vector<24x128xf32>
    %246 = arith.mulf %245, %72 : vector<24x128xf32>
    %247 = arith.addf %243, %246 : vector<24x128xf32>
    %c3_105 = arith.constant 3 : index
    %c9_106 = arith.constant 9 : index
    %248 = memref.load %arg4[%c3_105, %c9_106] : memref<10x10xf32, #tpu.memory_space<smem>>
    %249 = vector.broadcast %248 : f32 to vector<24x128xf32>
    %250 = arith.mulf %249, %80 : vector<24x128xf32>
    %251 = arith.addf %247, %250 : vector<24x128xf32>
    %c3_107 = arith.constant 3 : index
    %252 = memref.load %arg5[%c3_107] : memref<10xf32, #tpu.memory_space<smem>>
    %253 = vector.broadcast %252 : f32 to vector<24x128xf32>
    %254 = arith.addf %251, %253 : vector<24x128xf32>
    %cst_108 = arith.constant 0.000000e+00 : f32
    %255 = vector.broadcast %cst_108 : f32 to vector<24x128xf32>
    %256 = arith.maximumf %254, %255 : vector<24x128xf32>
    %c4_109 = arith.constant 4 : index
    %c0_110 = arith.constant 0 : index
    %257 = memref.load %arg4[%c4_109, %c0_110] : memref<10x10xf32, #tpu.memory_space<smem>>
    %258 = vector.broadcast %257 : f32 to vector<24x128xf32>
    %259 = arith.mulf %258, %8 : vector<24x128xf32>
    %c4_111 = arith.constant 4 : index
    %c1_112 = arith.constant 1 : index
    %260 = memref.load %arg4[%c4_111, %c1_112] : memref<10x10xf32, #tpu.memory_space<smem>>
    %261 = vector.broadcast %260 : f32 to vector<24x128xf32>
    %262 = arith.mulf %261, %16 : vector<24x128xf32>
    %263 = arith.addf %259, %262 : vector<24x128xf32>
    %c4_113 = arith.constant 4 : index
    %c2_114 = arith.constant 2 : index
    %264 = memref.load %arg4[%c4_113, %c2_114] : memref<10x10xf32, #tpu.memory_space<smem>>
    %265 = vector.broadcast %264 : f32 to vector<24x128xf32>
    %266 = arith.mulf %265, %24 : vector<24x128xf32>
    %267 = arith.addf %263, %266 : vector<24x128xf32>
    %c4_115 = arith.constant 4 : index
    %c3_116 = arith.constant 3 : index
    %268 = memref.load %arg4[%c4_115, %c3_116] : memref<10x10xf32, #tpu.memory_space<smem>>
    %269 = vector.broadcast %268 : f32 to vector<24x128xf32>
    %270 = arith.mulf %269, %32 : vector<24x128xf32>
    %271 = arith.addf %267, %270 : vector<24x128xf32>
    %c4_117 = arith.constant 4 : index
    %c4_118 = arith.constant 4 : index
    %272 = memref.load %arg4[%c4_117, %c4_118] : memref<10x10xf32, #tpu.memory_space<smem>>
    %273 = vector.broadcast %272 : f32 to vector<24x128xf32>
    %274 = arith.mulf %273, %40 : vector<24x128xf32>
    %275 = arith.addf %271, %274 : vector<24x128xf32>
    %c4_119 = arith.constant 4 : index
    %c5_120 = arith.constant 5 : index
    %276 = memref.load %arg4[%c4_119, %c5_120] : memref<10x10xf32, #tpu.memory_space<smem>>
    %277 = vector.broadcast %276 : f32 to vector<24x128xf32>
    %278 = arith.mulf %277, %48 : vector<24x128xf32>
    %279 = arith.addf %275, %278 : vector<24x128xf32>
    %c4_121 = arith.constant 4 : index
    %c6_122 = arith.constant 6 : index
    %280 = memref.load %arg4[%c4_121, %c6_122] : memref<10x10xf32, #tpu.memory_space<smem>>
    %281 = vector.broadcast %280 : f32 to vector<24x128xf32>
    %282 = arith.mulf %281, %56 : vector<24x128xf32>
    %283 = arith.addf %279, %282 : vector<24x128xf32>
    %c4_123 = arith.constant 4 : index
    %c7_124 = arith.constant 7 : index
    %284 = memref.load %arg4[%c4_123, %c7_124] : memref<10x10xf32, #tpu.memory_space<smem>>
    %285 = vector.broadcast %284 : f32 to vector<24x128xf32>
    %286 = arith.mulf %285, %64 : vector<24x128xf32>
    %287 = arith.addf %283, %286 : vector<24x128xf32>
    %c4_125 = arith.constant 4 : index
    %c8_126 = arith.constant 8 : index
    %288 = memref.load %arg4[%c4_125, %c8_126] : memref<10x10xf32, #tpu.memory_space<smem>>
    %289 = vector.broadcast %288 : f32 to vector<24x128xf32>
    %290 = arith.mulf %289, %72 : vector<24x128xf32>
    %291 = arith.addf %287, %290 : vector<24x128xf32>
    %c4_127 = arith.constant 4 : index
    %c9_128 = arith.constant 9 : index
    %292 = memref.load %arg4[%c4_127, %c9_128] : memref<10x10xf32, #tpu.memory_space<smem>>
    %293 = vector.broadcast %292 : f32 to vector<24x128xf32>
    %294 = arith.mulf %293, %80 : vector<24x128xf32>
    %295 = arith.addf %291, %294 : vector<24x128xf32>
    %c4_129 = arith.constant 4 : index
    %296 = memref.load %arg5[%c4_129] : memref<10xf32, #tpu.memory_space<smem>>
    %297 = vector.broadcast %296 : f32 to vector<24x128xf32>
    %298 = arith.addf %295, %297 : vector<24x128xf32>
    %cst_130 = arith.constant 0.000000e+00 : f32
    %299 = vector.broadcast %cst_130 : f32 to vector<24x128xf32>
    %300 = arith.maximumf %298, %299 : vector<24x128xf32>
    %c5_131 = arith.constant 5 : index
    %c0_132 = arith.constant 0 : index
    %301 = memref.load %arg4[%c5_131, %c0_132] : memref<10x10xf32, #tpu.memory_space<smem>>
    %302 = vector.broadcast %301 : f32 to vector<24x128xf32>
    %303 = arith.mulf %302, %8 : vector<24x128xf32>
    %c5_133 = arith.constant 5 : index
    %c1_134 = arith.constant 1 : index
    %304 = memref.load %arg4[%c5_133, %c1_134] : memref<10x10xf32, #tpu.memory_space<smem>>
    %305 = vector.broadcast %304 : f32 to vector<24x128xf32>
    %306 = arith.mulf %305, %16 : vector<24x128xf32>
    %307 = arith.addf %303, %306 : vector<24x128xf32>
    %c5_135 = arith.constant 5 : index
    %c2_136 = arith.constant 2 : index
    %308 = memref.load %arg4[%c5_135, %c2_136] : memref<10x10xf32, #tpu.memory_space<smem>>
    %309 = vector.broadcast %308 : f32 to vector<24x128xf32>
    %310 = arith.mulf %309, %24 : vector<24x128xf32>
    %311 = arith.addf %307, %310 : vector<24x128xf32>
    %c5_137 = arith.constant 5 : index
    %c3_138 = arith.constant 3 : index
    %312 = memref.load %arg4[%c5_137, %c3_138] : memref<10x10xf32, #tpu.memory_space<smem>>
    %313 = vector.broadcast %312 : f32 to vector<24x128xf32>
    %314 = arith.mulf %313, %32 : vector<24x128xf32>
    %315 = arith.addf %311, %314 : vector<24x128xf32>
    %c5_139 = arith.constant 5 : index
    %c4_140 = arith.constant 4 : index
    %316 = memref.load %arg4[%c5_139, %c4_140] : memref<10x10xf32, #tpu.memory_space<smem>>
    %317 = vector.broadcast %316 : f32 to vector<24x128xf32>
    %318 = arith.mulf %317, %40 : vector<24x128xf32>
    %319 = arith.addf %315, %318 : vector<24x128xf32>
    %c5_141 = arith.constant 5 : index
    %c5_142 = arith.constant 5 : index
    %320 = memref.load %arg4[%c5_141, %c5_142] : memref<10x10xf32, #tpu.memory_space<smem>>
    %321 = vector.broadcast %320 : f32 to vector<24x128xf32>
    %322 = arith.mulf %321, %48 : vector<24x128xf32>
    %323 = arith.addf %319, %322 : vector<24x128xf32>
    %c5_143 = arith.constant 5 : index
    %c6_144 = arith.constant 6 : index
    %324 = memref.load %arg4[%c5_143, %c6_144] : memref<10x10xf32, #tpu.memory_space<smem>>
    %325 = vector.broadcast %324 : f32 to vector<24x128xf32>
    %326 = arith.mulf %325, %56 : vector<24x128xf32>
    %327 = arith.addf %323, %326 : vector<24x128xf32>
    %c5_145 = arith.constant 5 : index
    %c7_146 = arith.constant 7 : index
    %328 = memref.load %arg4[%c5_145, %c7_146] : memref<10x10xf32, #tpu.memory_space<smem>>
    %329 = vector.broadcast %328 : f32 to vector<24x128xf32>
    %330 = arith.mulf %329, %64 : vector<24x128xf32>
    %331 = arith.addf %327, %330 : vector<24x128xf32>
    %c5_147 = arith.constant 5 : index
    %c8_148 = arith.constant 8 : index
    %332 = memref.load %arg4[%c5_147, %c8_148] : memref<10x10xf32, #tpu.memory_space<smem>>
    %333 = vector.broadcast %332 : f32 to vector<24x128xf32>
    %334 = arith.mulf %333, %72 : vector<24x128xf32>
    %335 = arith.addf %331, %334 : vector<24x128xf32>
    %c5_149 = arith.constant 5 : index
    %c9_150 = arith.constant 9 : index
    %336 = memref.load %arg4[%c5_149, %c9_150] : memref<10x10xf32, #tpu.memory_space<smem>>
    %337 = vector.broadcast %336 : f32 to vector<24x128xf32>
    %338 = arith.mulf %337, %80 : vector<24x128xf32>
    %339 = arith.addf %335, %338 : vector<24x128xf32>
    %c5_151 = arith.constant 5 : index
    %340 = memref.load %arg5[%c5_151] : memref<10xf32, #tpu.memory_space<smem>>
    %341 = vector.broadcast %340 : f32 to vector<24x128xf32>
    %342 = arith.addf %339, %341 : vector<24x128xf32>
    %cst_152 = arith.constant 0.000000e+00 : f32
    %343 = vector.broadcast %cst_152 : f32 to vector<24x128xf32>
    %344 = arith.maximumf %342, %343 : vector<24x128xf32>
    %c6_153 = arith.constant 6 : index
    %c0_154 = arith.constant 0 : index
    %345 = memref.load %arg4[%c6_153, %c0_154] : memref<10x10xf32, #tpu.memory_space<smem>>
    %346 = vector.broadcast %345 : f32 to vector<24x128xf32>
    %347 = arith.mulf %346, %8 : vector<24x128xf32>
    %c6_155 = arith.constant 6 : index
    %c1_156 = arith.constant 1 : index
    %348 = memref.load %arg4[%c6_155, %c1_156] : memref<10x10xf32, #tpu.memory_space<smem>>
    %349 = vector.broadcast %348 : f32 to vector<24x128xf32>
    %350 = arith.mulf %349, %16 : vector<24x128xf32>
    %351 = arith.addf %347, %350 : vector<24x128xf32>
    %c6_157 = arith.constant 6 : index
    %c2_158 = arith.constant 2 : index
    %352 = memref.load %arg4[%c6_157, %c2_158] : memref<10x10xf32, #tpu.memory_space<smem>>
    %353 = vector.broadcast %352 : f32 to vector<24x128xf32>
    %354 = arith.mulf %353, %24 : vector<24x128xf32>
    %355 = arith.addf %351, %354 : vector<24x128xf32>
    %c6_159 = arith.constant 6 : index
    %c3_160 = arith.constant 3 : index
    %356 = memref.load %arg4[%c6_159, %c3_160] : memref<10x10xf32, #tpu.memory_space<smem>>
    %357 = vector.broadcast %356 : f32 to vector<24x128xf32>
    %358 = arith.mulf %357, %32 : vector<24x128xf32>
    %359 = arith.addf %355, %358 : vector<24x128xf32>
    %c6_161 = arith.constant 6 : index
    %c4_162 = arith.constant 4 : index
    %360 = memref.load %arg4[%c6_161, %c4_162] : memref<10x10xf32, #tpu.memory_space<smem>>
    %361 = vector.broadcast %360 : f32 to vector<24x128xf32>
    %362 = arith.mulf %361, %40 : vector<24x128xf32>
    %363 = arith.addf %359, %362 : vector<24x128xf32>
    %c6_163 = arith.constant 6 : index
    %c5_164 = arith.constant 5 : index
    %364 = memref.load %arg4[%c6_163, %c5_164] : memref<10x10xf32, #tpu.memory_space<smem>>
    %365 = vector.broadcast %364 : f32 to vector<24x128xf32>
    %366 = arith.mulf %365, %48 : vector<24x128xf32>
    %367 = arith.addf %363, %366 : vector<24x128xf32>
    %c6_165 = arith.constant 6 : index
    %c6_166 = arith.constant 6 : index
    %368 = memref.load %arg4[%c6_165, %c6_166] : memref<10x10xf32, #tpu.memory_space<smem>>
    %369 = vector.broadcast %368 : f32 to vector<24x128xf32>
    %370 = arith.mulf %369, %56 : vector<24x128xf32>
    %371 = arith.addf %367, %370 : vector<24x128xf32>
    %c6_167 = arith.constant 6 : index
    %c7_168 = arith.constant 7 : index
    %372 = memref.load %arg4[%c6_167, %c7_168] : memref<10x10xf32, #tpu.memory_space<smem>>
    %373 = vector.broadcast %372 : f32 to vector<24x128xf32>
    %374 = arith.mulf %373, %64 : vector<24x128xf32>
    %375 = arith.addf %371, %374 : vector<24x128xf32>
    %c6_169 = arith.constant 6 : index
    %c8_170 = arith.constant 8 : index
    %376 = memref.load %arg4[%c6_169, %c8_170] : memref<10x10xf32, #tpu.memory_space<smem>>
    %377 = vector.broadcast %376 : f32 to vector<24x128xf32>
    %378 = arith.mulf %377, %72 : vector<24x128xf32>
    %379 = arith.addf %375, %378 : vector<24x128xf32>
    %c6_171 = arith.constant 6 : index
    %c9_172 = arith.constant 9 : index
    %380 = memref.load %arg4[%c6_171, %c9_172] : memref<10x10xf32, #tpu.memory_space<smem>>
    %381 = vector.broadcast %380 : f32 to vector<24x128xf32>
    %382 = arith.mulf %381, %80 : vector<24x128xf32>
    %383 = arith.addf %379, %382 : vector<24x128xf32>
    %c6_173 = arith.constant 6 : index
    %384 = memref.load %arg5[%c6_173] : memref<10xf32, #tpu.memory_space<smem>>
    %385 = vector.broadcast %384 : f32 to vector<24x128xf32>
    %386 = arith.addf %383, %385 : vector<24x128xf32>
    %cst_174 = arith.constant 0.000000e+00 : f32
    %387 = vector.broadcast %cst_174 : f32 to vector<24x128xf32>
    %388 = arith.maximumf %386, %387 : vector<24x128xf32>
    %c7_175 = arith.constant 7 : index
    %c0_176 = arith.constant 0 : index
    %389 = memref.load %arg4[%c7_175, %c0_176] : memref<10x10xf32, #tpu.memory_space<smem>>
    %390 = vector.broadcast %389 : f32 to vector<24x128xf32>
    %391 = arith.mulf %390, %8 : vector<24x128xf32>
    %c7_177 = arith.constant 7 : index
    %c1_178 = arith.constant 1 : index
    %392 = memref.load %arg4[%c7_177, %c1_178] : memref<10x10xf32, #tpu.memory_space<smem>>
    %393 = vector.broadcast %392 : f32 to vector<24x128xf32>
    %394 = arith.mulf %393, %16 : vector<24x128xf32>
    %395 = arith.addf %391, %394 : vector<24x128xf32>
    %c7_179 = arith.constant 7 : index
    %c2_180 = arith.constant 2 : index
    %396 = memref.load %arg4[%c7_179, %c2_180] : memref<10x10xf32, #tpu.memory_space<smem>>
    %397 = vector.broadcast %396 : f32 to vector<24x128xf32>
    %398 = arith.mulf %397, %24 : vector<24x128xf32>
    %399 = arith.addf %395, %398 : vector<24x128xf32>
    %c7_181 = arith.constant 7 : index
    %c3_182 = arith.constant 3 : index
    %400 = memref.load %arg4[%c7_181, %c3_182] : memref<10x10xf32, #tpu.memory_space<smem>>
    %401 = vector.broadcast %400 : f32 to vector<24x128xf32>
    %402 = arith.mulf %401, %32 : vector<24x128xf32>
    %403 = arith.addf %399, %402 : vector<24x128xf32>
    %c7_183 = arith.constant 7 : index
    %c4_184 = arith.constant 4 : index
    %404 = memref.load %arg4[%c7_183, %c4_184] : memref<10x10xf32, #tpu.memory_space<smem>>
    %405 = vector.broadcast %404 : f32 to vector<24x128xf32>
    %406 = arith.mulf %405, %40 : vector<24x128xf32>
    %407 = arith.addf %403, %406 : vector<24x128xf32>
    %c7_185 = arith.constant 7 : index
    %c5_186 = arith.constant 5 : index
    %408 = memref.load %arg4[%c7_185, %c5_186] : memref<10x10xf32, #tpu.memory_space<smem>>
    %409 = vector.broadcast %408 : f32 to vector<24x128xf32>
    %410 = arith.mulf %409, %48 : vector<24x128xf32>
    %411 = arith.addf %407, %410 : vector<24x128xf32>
    %c7_187 = arith.constant 7 : index
    %c6_188 = arith.constant 6 : index
    %412 = memref.load %arg4[%c7_187, %c6_188] : memref<10x10xf32, #tpu.memory_space<smem>>
    %413 = vector.broadcast %412 : f32 to vector<24x128xf32>
    %414 = arith.mulf %413, %56 : vector<24x128xf32>
    %415 = arith.addf %411, %414 : vector<24x128xf32>
    %c7_189 = arith.constant 7 : index
    %c7_190 = arith.constant 7 : index
    %416 = memref.load %arg4[%c7_189, %c7_190] : memref<10x10xf32, #tpu.memory_space<smem>>
    %417 = vector.broadcast %416 : f32 to vector<24x128xf32>
    %418 = arith.mulf %417, %64 : vector<24x128xf32>
    %419 = arith.addf %415, %418 : vector<24x128xf32>
    %c7_191 = arith.constant 7 : index
    %c8_192 = arith.constant 8 : index
    %420 = memref.load %arg4[%c7_191, %c8_192] : memref<10x10xf32, #tpu.memory_space<smem>>
    %421 = vector.broadcast %420 : f32 to vector<24x128xf32>
    %422 = arith.mulf %421, %72 : vector<24x128xf32>
    %423 = arith.addf %419, %422 : vector<24x128xf32>
    %c7_193 = arith.constant 7 : index
    %c9_194 = arith.constant 9 : index
    %424 = memref.load %arg4[%c7_193, %c9_194] : memref<10x10xf32, #tpu.memory_space<smem>>
    %425 = vector.broadcast %424 : f32 to vector<24x128xf32>
    %426 = arith.mulf %425, %80 : vector<24x128xf32>
    %427 = arith.addf %423, %426 : vector<24x128xf32>
    %c7_195 = arith.constant 7 : index
    %428 = memref.load %arg5[%c7_195] : memref<10xf32, #tpu.memory_space<smem>>
    %429 = vector.broadcast %428 : f32 to vector<24x128xf32>
    %430 = arith.addf %427, %429 : vector<24x128xf32>
    %cst_196 = arith.constant 0.000000e+00 : f32
    %431 = vector.broadcast %cst_196 : f32 to vector<24x128xf32>
    %432 = arith.maximumf %430, %431 : vector<24x128xf32>
    %c8_197 = arith.constant 8 : index
    %c0_198 = arith.constant 0 : index
    %433 = memref.load %arg4[%c8_197, %c0_198] : memref<10x10xf32, #tpu.memory_space<smem>>
    %434 = vector.broadcast %433 : f32 to vector<24x128xf32>
    %435 = arith.mulf %434, %8 : vector<24x128xf32>
    %c8_199 = arith.constant 8 : index
    %c1_200 = arith.constant 1 : index
    %436 = memref.load %arg4[%c8_199, %c1_200] : memref<10x10xf32, #tpu.memory_space<smem>>
    %437 = vector.broadcast %436 : f32 to vector<24x128xf32>
    %438 = arith.mulf %437, %16 : vector<24x128xf32>
    %439 = arith.addf %435, %438 : vector<24x128xf32>
    %c8_201 = arith.constant 8 : index
    %c2_202 = arith.constant 2 : index
    %440 = memref.load %arg4[%c8_201, %c2_202] : memref<10x10xf32, #tpu.memory_space<smem>>
    %441 = vector.broadcast %440 : f32 to vector<24x128xf32>
    %442 = arith.mulf %441, %24 : vector<24x128xf32>
    %443 = arith.addf %439, %442 : vector<24x128xf32>
    %c8_203 = arith.constant 8 : index
    %c3_204 = arith.constant 3 : index
    %444 = memref.load %arg4[%c8_203, %c3_204] : memref<10x10xf32, #tpu.memory_space<smem>>
    %445 = vector.broadcast %444 : f32 to vector<24x128xf32>
    %446 = arith.mulf %445, %32 : vector<24x128xf32>
    %447 = arith.addf %443, %446 : vector<24x128xf32>
    %c8_205 = arith.constant 8 : index
    %c4_206 = arith.constant 4 : index
    %448 = memref.load %arg4[%c8_205, %c4_206] : memref<10x10xf32, #tpu.memory_space<smem>>
    %449 = vector.broadcast %448 : f32 to vector<24x128xf32>
    %450 = arith.mulf %449, %40 : vector<24x128xf32>
    %451 = arith.addf %447, %450 : vector<24x128xf32>
    %c8_207 = arith.constant 8 : index
    %c5_208 = arith.constant 5 : index
    %452 = memref.load %arg4[%c8_207, %c5_208] : memref<10x10xf32, #tpu.memory_space<smem>>
    %453 = vector.broadcast %452 : f32 to vector<24x128xf32>
    %454 = arith.mulf %453, %48 : vector<24x128xf32>
    %455 = arith.addf %451, %454 : vector<24x128xf32>
    %c8_209 = arith.constant 8 : index
    %c6_210 = arith.constant 6 : index
    %456 = memref.load %arg4[%c8_209, %c6_210] : memref<10x10xf32, #tpu.memory_space<smem>>
    %457 = vector.broadcast %456 : f32 to vector<24x128xf32>
    %458 = arith.mulf %457, %56 : vector<24x128xf32>
    %459 = arith.addf %455, %458 : vector<24x128xf32>
    %c8_211 = arith.constant 8 : index
    %c7_212 = arith.constant 7 : index
    %460 = memref.load %arg4[%c8_211, %c7_212] : memref<10x10xf32, #tpu.memory_space<smem>>
    %461 = vector.broadcast %460 : f32 to vector<24x128xf32>
    %462 = arith.mulf %461, %64 : vector<24x128xf32>
    %463 = arith.addf %459, %462 : vector<24x128xf32>
    %c8_213 = arith.constant 8 : index
    %c8_214 = arith.constant 8 : index
    %464 = memref.load %arg4[%c8_213, %c8_214] : memref<10x10xf32, #tpu.memory_space<smem>>
    %465 = vector.broadcast %464 : f32 to vector<24x128xf32>
    %466 = arith.mulf %465, %72 : vector<24x128xf32>
    %467 = arith.addf %463, %466 : vector<24x128xf32>
    %c8_215 = arith.constant 8 : index
    %c9_216 = arith.constant 9 : index
    %468 = memref.load %arg4[%c8_215, %c9_216] : memref<10x10xf32, #tpu.memory_space<smem>>
    %469 = vector.broadcast %468 : f32 to vector<24x128xf32>
    %470 = arith.mulf %469, %80 : vector<24x128xf32>
    %471 = arith.addf %467, %470 : vector<24x128xf32>
    %c8_217 = arith.constant 8 : index
    %472 = memref.load %arg5[%c8_217] : memref<10xf32, #tpu.memory_space<smem>>
    %473 = vector.broadcast %472 : f32 to vector<24x128xf32>
    %474 = arith.addf %471, %473 : vector<24x128xf32>
    %cst_218 = arith.constant 0.000000e+00 : f32
    %475 = vector.broadcast %cst_218 : f32 to vector<24x128xf32>
    %476 = arith.maximumf %474, %475 : vector<24x128xf32>
    %c9_219 = arith.constant 9 : index
    %c0_220 = arith.constant 0 : index
    %477 = memref.load %arg4[%c9_219, %c0_220] : memref<10x10xf32, #tpu.memory_space<smem>>
    %478 = vector.broadcast %477 : f32 to vector<24x128xf32>
    %479 = arith.mulf %478, %8 : vector<24x128xf32>
    %c9_221 = arith.constant 9 : index
    %c1_222 = arith.constant 1 : index
    %480 = memref.load %arg4[%c9_221, %c1_222] : memref<10x10xf32, #tpu.memory_space<smem>>
    %481 = vector.broadcast %480 : f32 to vector<24x128xf32>
    %482 = arith.mulf %481, %16 : vector<24x128xf32>
    %483 = arith.addf %479, %482 : vector<24x128xf32>
    %c9_223 = arith.constant 9 : index
    %c2_224 = arith.constant 2 : index
    %484 = memref.load %arg4[%c9_223, %c2_224] : memref<10x10xf32, #tpu.memory_space<smem>>
    %485 = vector.broadcast %484 : f32 to vector<24x128xf32>
    %486 = arith.mulf %485, %24 : vector<24x128xf32>
    %487 = arith.addf %483, %486 : vector<24x128xf32>
    %c9_225 = arith.constant 9 : index
    %c3_226 = arith.constant 3 : index
    %488 = memref.load %arg4[%c9_225, %c3_226] : memref<10x10xf32, #tpu.memory_space<smem>>
    %489 = vector.broadcast %488 : f32 to vector<24x128xf32>
    %490 = arith.mulf %489, %32 : vector<24x128xf32>
    %491 = arith.addf %487, %490 : vector<24x128xf32>
    %c9_227 = arith.constant 9 : index
    %c4_228 = arith.constant 4 : index
    %492 = memref.load %arg4[%c9_227, %c4_228] : memref<10x10xf32, #tpu.memory_space<smem>>
    %493 = vector.broadcast %492 : f32 to vector<24x128xf32>
    %494 = arith.mulf %493, %40 : vector<24x128xf32>
    %495 = arith.addf %491, %494 : vector<24x128xf32>
    %c9_229 = arith.constant 9 : index
    %c5_230 = arith.constant 5 : index
    %496 = memref.load %arg4[%c9_229, %c5_230] : memref<10x10xf32, #tpu.memory_space<smem>>
    %497 = vector.broadcast %496 : f32 to vector<24x128xf32>
    %498 = arith.mulf %497, %48 : vector<24x128xf32>
    %499 = arith.addf %495, %498 : vector<24x128xf32>
    %c9_231 = arith.constant 9 : index
    %c6_232 = arith.constant 6 : index
    %500 = memref.load %arg4[%c9_231, %c6_232] : memref<10x10xf32, #tpu.memory_space<smem>>
    %501 = vector.broadcast %500 : f32 to vector<24x128xf32>
    %502 = arith.mulf %501, %56 : vector<24x128xf32>
    %503 = arith.addf %499, %502 : vector<24x128xf32>
    %c9_233 = arith.constant 9 : index
    %c7_234 = arith.constant 7 : index
    %504 = memref.load %arg4[%c9_233, %c7_234] : memref<10x10xf32, #tpu.memory_space<smem>>
    %505 = vector.broadcast %504 : f32 to vector<24x128xf32>
    %506 = arith.mulf %505, %64 : vector<24x128xf32>
    %507 = arith.addf %503, %506 : vector<24x128xf32>
    %c9_235 = arith.constant 9 : index
    %c8_236 = arith.constant 8 : index
    %508 = memref.load %arg4[%c9_235, %c8_236] : memref<10x10xf32, #tpu.memory_space<smem>>
    %509 = vector.broadcast %508 : f32 to vector<24x128xf32>
    %510 = arith.mulf %509, %72 : vector<24x128xf32>
    %511 = arith.addf %507, %510 : vector<24x128xf32>
    %c9_237 = arith.constant 9 : index
    %c9_238 = arith.constant 9 : index
    %512 = memref.load %arg4[%c9_237, %c9_238] : memref<10x10xf32, #tpu.memory_space<smem>>
    %513 = vector.broadcast %512 : f32 to vector<24x128xf32>
    %514 = arith.mulf %513, %80 : vector<24x128xf32>
    %515 = arith.addf %511, %514 : vector<24x128xf32>
    %c9_239 = arith.constant 9 : index
    %516 = memref.load %arg5[%c9_239] : memref<10xf32, #tpu.memory_space<smem>>
    %517 = vector.broadcast %516 : f32 to vector<24x128xf32>
    %518 = arith.addf %515, %517 : vector<24x128xf32>
    %cst_240 = arith.constant 0.000000e+00 : f32
    %519 = vector.broadcast %cst_240 : f32 to vector<24x128xf32>
    %520 = arith.maximumf %518, %519 : vector<24x128xf32>
    %c0_241 = arith.constant 0 : index
    %521 = memref.load %arg6[%c0_241] : memref<10xf32, #tpu.memory_space<smem>>
    %522 = vector.broadcast %521 : f32 to vector<24x128xf32>
    %523 = arith.mulf %522, %124 : vector<24x128xf32>
    %c1_242 = arith.constant 1 : index
    %524 = memref.load %arg6[%c1_242] : memref<10xf32, #tpu.memory_space<smem>>
    %525 = vector.broadcast %524 : f32 to vector<24x128xf32>
    %526 = arith.mulf %525, %168 : vector<24x128xf32>
    %527 = arith.addf %523, %526 : vector<24x128xf32>
    %c2_243 = arith.constant 2 : index
    %528 = memref.load %arg6[%c2_243] : memref<10xf32, #tpu.memory_space<smem>>
    %529 = vector.broadcast %528 : f32 to vector<24x128xf32>
    %530 = arith.mulf %529, %212 : vector<24x128xf32>
    %531 = arith.addf %527, %530 : vector<24x128xf32>
    %c3_244 = arith.constant 3 : index
    %532 = memref.load %arg6[%c3_244] : memref<10xf32, #tpu.memory_space<smem>>
    %533 = vector.broadcast %532 : f32 to vector<24x128xf32>
    %534 = arith.mulf %533, %256 : vector<24x128xf32>
    %535 = arith.addf %531, %534 : vector<24x128xf32>
    %c4_245 = arith.constant 4 : index
    %536 = memref.load %arg6[%c4_245] : memref<10xf32, #tpu.memory_space<smem>>
    %537 = vector.broadcast %536 : f32 to vector<24x128xf32>
    %538 = arith.mulf %537, %300 : vector<24x128xf32>
    %539 = arith.addf %535, %538 : vector<24x128xf32>
    %c5_246 = arith.constant 5 : index
    %540 = memref.load %arg6[%c5_246] : memref<10xf32, #tpu.memory_space<smem>>
    %541 = vector.broadcast %540 : f32 to vector<24x128xf32>
    %542 = arith.mulf %541, %344 : vector<24x128xf32>
    %543 = arith.addf %539, %542 : vector<24x128xf32>
    %c6_247 = arith.constant 6 : index
    %544 = memref.load %arg6[%c6_247] : memref<10xf32, #tpu.memory_space<smem>>
    %545 = vector.broadcast %544 : f32 to vector<24x128xf32>
    %546 = arith.mulf %545, %388 : vector<24x128xf32>
    %547 = arith.addf %543, %546 : vector<24x128xf32>
    %c7_248 = arith.constant 7 : index
    %548 = memref.load %arg6[%c7_248] : memref<10xf32, #tpu.memory_space<smem>>
    %549 = vector.broadcast %548 : f32 to vector<24x128xf32>
    %550 = arith.mulf %549, %432 : vector<24x128xf32>
    %551 = arith.addf %547, %550 : vector<24x128xf32>
    %c8_249 = arith.constant 8 : index
    %552 = memref.load %arg6[%c8_249] : memref<10xf32, #tpu.memory_space<smem>>
    %553 = vector.broadcast %552 : f32 to vector<24x128xf32>
    %554 = arith.mulf %553, %476 : vector<24x128xf32>
    %555 = arith.addf %551, %554 : vector<24x128xf32>
    %c9_250 = arith.constant 9 : index
    %556 = memref.load %arg6[%c9_250] : memref<10xf32, #tpu.memory_space<smem>>
    %557 = vector.broadcast %556 : f32 to vector<24x128xf32>
    %558 = arith.mulf %557, %520 : vector<24x128xf32>
    %559 = arith.addf %555, %558 : vector<24x128xf32>
    %c0_251 = arith.constant 0 : index
    %560 = memref.load %arg7[%c0_251] : memref<1xf32, #tpu.memory_space<smem>>
    %561 = vector.broadcast %560 : f32 to vector<24x128xf32>
    %562 = arith.addf %559, %561 : vector<24x128xf32>
    %c0_252 = arith.constant 0 : index
    %c0_253 = arith.constant 0 : index
    %563 = vector.load %arg8[%c0_252, %c0_253] : memref<24x128xf32, #tpu.memory_space<vmem>>, vector<24x128xf32>
    tpu.vector_store %arg8[%c0_252, %c0_253], %562 {strides = array<i32>} : memref<24x128xf32, #tpu.memory_space<vmem>>, vector<24x128xf32>,
    return
  }
  func.func @transform_0(%arg0: i32) -> (i32, i32) {
    %c0_i32 = arith.constant 0 : i32
    %c0_i32_0 = arith.constant 0 : i32
    return %arg0, %c0_i32 : i32, i32
  }
  func.func @transform_1(%arg0: i32) -> i32 {
    %c0_i32 = arith.constant 0 : i32
    %c0_i32_0 = arith.constant 0 : i32
    return %c0_i32 : i32
  }
  func.func @transform_2(%arg0: i32) -> i32 {
    %c0_i32 = arith.constant 0 : i32
    %c0_i32_0 = arith.constant 0 : i32
    return %c0_i32 : i32
  }
  func.func @transform_3(%arg0: i32) -> (i32, i32) {
    %c0_i32 = arith.constant 0 : i32
    %c0_i32_0 = arith.constant 0 : i32
    %c0_i32_1 = arith.constant 0 : i32
    return %c0_i32, %c0_i32_0 : i32, i32
  }
  func.func @transform_4(%arg0: i32) -> i32 {
    %c0_i32 = arith.constant 0 : i32
    %c0_i32_0 = arith.constant 0 : i32
    return %c0_i32 : i32
  }
  func.func @transform_5(%arg0: i32) -> i32 {
    %c0_i32 = arith.constant 0 : i32
    %c0_i32_0 = arith.constant 0 : i32
    return %c0_i32 : i32
  }
  func.func @transform_6(%arg0: i32) -> i32 {
    %c0_i32 = arith.constant 0 : i32
    %c0_i32_0 = arith.constant 0 : i32
    return %c0_i32 : i32
  }
  func.func @transform_7(%arg0: i32) -> (i32, i32) {
    %c0_i32 = arith.constant 0 : i32
    %c0_i32_0 = arith.constant 0 : i32
    return %arg0, %c0_i32 : i32, i32
  }
}

</mosaic_0001>

<bundles_post_ra>
// kernel: tpu_custom_call.1
= control target key start
LH: loop header
LB: loop body
LE: loop exit
PB: predicated region body
PF: predicated region fallthrough
CT: control target
= control target key end

     0   :  { %s3266_s0 = inlined_call_operand.hbm [shape: f32[48,128], index: 0, kind: input, shape index: {}]   ;;  %s3267_s1 = inlined_call_operand.vmem [shape: f32[10], index: 1, kind: input, shape index: {}]   ;;  %s3268_s2 = inlined_call_operand.vmem [shape: f32[10], index: 2, kind: input, shape index: {}]   ;;  %s3269_s3 = inlined_call_operand.hbm [shape: f32[10,10], index: 3, kind: input, shape index: {}]   ;;  %s3270_s4 = inlined_call_operand.vmem [shape: f32[10], index: 4, kind: input, shape index: {}]   ;;  %s3271_s5 = inlined_call_operand.vmem [shape: f32[10], index: 5, kind: input, shape index: {}]   ;;  %s3272_s6 = inlined_call_operand.<no memory space> [shape: f32[1], index: 6, kind: input, shape index: {}]   ;;  %s3273_s7 = inlined_call_operand.hbm [shape: f32[48,128], index: 7, kind: output, shape index: {}]  }
   0x1   :  { %12 = sst [smem:[#allocation2]] %s3272_s6 }
   0x2   :  { %13 = vsyncpa [#allocation4], 0 }
   0x3   :  { %15 = vsyncpa [#allocation4 + $0x1], 0 }
   0x4   :  { %16 = vsyncpa [#allocation7], 0 }
   0x5   :  { %17 = vsyncpa [#allocation10], 0 }
   0x6   :  { %18 = vsyncpa [#allocation6], 0 }
   0x7   :  { %19 = vsyncpa [#allocation14], 0 }
   0x8   :  { %20 = vsyncpa [#allocation5], 0 }
   0x9   :  { %22 = vsyncpa [#allocation5 + $0x1], 0  ;;  %s2076_s26 = smov 0   ;;  %s2078_s27 = smov 0  }
   0xa   :  { %s2080_s28 = smov 0   ;;  %s2082_s29 = smov 0  }
   0xb LB: > { %s235_s8 = sshll.u32 %s3268_s2, 4  ;;  %s2100_s9 = sadd.s32 4294967295, %s2020_s29   ;;  %s2020_s29 = sphi %s2082_s29, %s3374_s29   ;;  %s2016_s28 = sphi %s2080_s28, %s3373_s28   ;;  %s2012_s27 = sphi %s2078_s27, %s3372_s27   ;;  %s2008_s26 = sphi %s2076_s26, %s3371_s26   ;;  %s236_s8 = int_to_ptr.vmem [resolvable:$true] %s235_s8 }
   0xc   : > { %p1574_p0 = scmp.ge.s32.totalorder %s2020_s29, 1  ;;  %p3274_p1 = scmp.eq.s32.totalorder %s2100_s9, 0 }
   0xd   : > { %p211_p2 = scmp.lt.s32.totalorder %s2020_s29, 3  ;;  %s224_s13 = sshll.u32 %s3267_s1, 4  ;;  %s225_s13 = int_to_ptr.vmem [resolvable:$true] %s224_s13 }
   0xe   : > { %s257_s17 = sshll.u32 %s3270_s4, 4  ;;  %s1831_s18 = scalar_lea.vmem %s236_s8, 16  ;;  %s2124_s17 = int_to_ptr.vmem [resolvable:$true] %s257_s17 }
   0xf   : > { %p2105_p3 = pnand %p1574_p0, %p211_p2  ;;  %p1832_p7 = scmp.ne.s32.totalorder %s236_s8, %s1831_s18 }
  0x10   : > { %p1839_p11 = scmp.lt.s32.totalorder %s236_s8, %s236_s8  ;;  %p1840_p12 = scmp.lt.s32.totalorder %s1831_s18, %s1831_s18 }
  0x11   : > { %s3294_s10 = scalar_select %p2105_p3, 1, 0 }
  0x12   : > { %p1754_p5 = pneg %p2105_p3  ;;  %p1841_p13 = por %p1840_p12, %p1839_p11 }
  0x14   : > { %p2117_p6 = pnand %p1754_p5, %p3274_p1 }
  0x16   : > { %p2128_p8 = pneg %p2117_p6 }
  0x18   : > { %p1834_p9 = pnand %p2128_p8, %p1832_p7 }
  0x1a   : > { %p1835_p10 = pneg %p1834_p9 }
  0x1c   : > { %p1842_p0 = pnand %p1841_p13, %p1835_p10 }
  0x1e   : > { %1845 = shalt.err (!%p1842_p0)
}
  0x1f   : > { %s2022_s20 = smov [#allocation9]   ;;  %s1846_s21 = scalar_lea.vmem %s225_s13, 16 }
  0x20   : > { %1760 = dma.vmem_to_smem (!%p2117_p6), %s236_s8, 16, %s2022_s20, [#allocation10]  }
  0x21   : > { %p1847_p2 = scmp.ne.s32.totalorder %s225_s13, %s1846_s21  ;;  %p1854_p1 = scmp.lt.s32.totalorder %s225_s13, %s225_s13 }
  0x22   : > { %p1855_p3 = scmp.lt.s32.totalorder %s1846_s21, %s1846_s21 }
  0x23   : > { %p1849_p5 = pnand %p1847_p2, %p2128_p8 }
  0x24   : > { %p1856_p7 = por %p1855_p3, %p1854_p1 }
  0x25   : > { %p1850_p4 = pneg %p1849_p5 }
  0x27   : > { %p1857_p9 = pnand %p1856_p7, %p1850_p4 }
  0x29   : > { %1860 = shalt.err (!%p1857_p9)
}
  0x2a   : > { %s2023_s22 = smov [#allocation8]   ;;  %s1861_s25 = scalar_lea.hbm %s3269_s3, 256 }
  0x2b   : > { %1757 = dma.vmem_to_smem (!%p2117_p6), %s225_s13, 16, %s2023_s22, [#allocation7]  }
  0x2c   : > { %p1862_p10 = scmp.ne.s32.totalorder %s3269_s3, %s1861_s25  ;;  %p1868_p1 = scmp.lt.u32.totalorder %s1861_s25, %s3269_s3 }
  0x2e   : > { %p1864_p11 = pnand %p1862_p10, %p2128_p8 }
  0x30   : > { %p1865_p12 = pneg %p1864_p11 }
  0x32   : > { %p1870_p3 = pnand %p1868_p1, %p1865_p12 }
  0x34   : > { %1873 = shalt.err (!%p1870_p3)
}
  0x35   : > { %s2024_s12 = smov [#allocation11]   ;;  %s3276_s13 = smov 128  }
  0x36   : > { %s3277_s15 = smov 8   ;;  %s1874_s20 = scalar_lea.vmem %s2124_s17, 16 }
  0x37   : > { %1763 = dma.hbm_to_smem (!%p2117_p6), %s3269_s3, 256, %s2024_s12, [#allocation6], %s3276_s13, %s3276_s13, %s3277_s15  }
  0x38   : > { %p1875_p4 = scmp.ne.s32.totalorder %s2124_s17, %s1874_s20  ;;  %p1882_p2 = scmp.lt.s32.totalorder %s2124_s17, %s2124_s17 }
  0x39   : > { %p1883_p5 = scmp.lt.s32.totalorder %s1874_s20, %s1874_s20 }
  0x3a   : > { %p1877_p13 = pnand %p1875_p4, %p2128_p8 }
  0x3b   : > { %p1884_p7 = por %p1883_p5, %p1882_p2 }
  0x3c   : > { %p1878_p0 = pneg %p1877_p13 }
  0x3e   : > { %p1885_p9 = pnand %p1884_p7, %p1878_p0 }
  0x40   : > { %1888 = shalt.err (!%p1885_p9)
}
  0x41   : > { %s2027_s21 = smov [#allocation12]   ;;  %s268_s24 = sshll.u32 %s3271_s5, 4  ;;  %s269_s24 = int_to_ptr.vmem [resolvable:$true] %s268_s24 }
  0x42   : > { %1766 = dma.vmem_to_smem (!%p2117_p6), %s2124_s17, 16, %s2027_s21, [#allocation10]  }
  0x43   : > { %s1889_s25 = scalar_lea.vmem %s269_s24, 16  ;;  %p1897_p1 = scmp.lt.s32.totalorder %s269_s24, %s269_s24 }
  0x44   : > { %p1890_p10 = scmp.ne.s32.totalorder %s269_s24, %s1889_s25  ;;  %p1898_p3 = scmp.lt.s32.totalorder %s1889_s25, %s1889_s25 }
  0x46   : > { %p1892_p11 = pnand %p1890_p10, %p2128_p8  ;;  %p1899_p4 = por %p1898_p3, %p1897_p1 }
  0x48   : > { %p1893_p12 = pneg %p1892_p11 }
  0x4a   : > { %p1900_p13 = pnand %p1899_p4, %p1893_p12 }
  0x4c   : > { %1903 = shalt.err (!%p1900_p13)
}
  0x4d   : > { %s2028_s6 = smov [#allocation13]   ;;  %s1573_s17 = sadd.s32 4294967294, %s2020_s29  }
  0x4e   : > { %1769 = dma.vmem_to_smem (!%p2117_p6), %s269_s24, 16, %s2028_s6, [#allocation14]  }
  0x4f   : > { %s2177_s19 = sadd.s32 1, %s2020_s29   ;;  %s35_s14 = sadd.s32 1, %s2016_s28 }
  0x50   : > { %s32_s30 = ssub.s32 %s2020_s29, %s2177_s19  ;;  %p42_p8 = scmp.ne.s32.totalorder %s2016_s28, %s2012_s27 }
  0x51   : > { %p33_p0 = scmp.eq.s32.totalorder %s32_s30, 0  ;;  %p43_p2 = scmp.eq.s32.totalorder %s2020_s29, 0 }
  0x52   : > { %p48_p5 = scmp.ne.s32.totalorder %s2012_s27, %s2008_s26  ;;  %p198_p7 = scmp.eq.s32.totalorder %s2100_s9, 1 }
  0x53   : > { %s2189_s8 = scalar_select %p33_p0, %s2016_s28, %s35_s14  }
  0x54   : > { %p44_p9 = por %p43_p2, %p42_p8  ;;  %p3297_p10 = scmp.eq.s32.totalorder %s2100_s9, 0 }
  0x55   : > { %p2197_p6 = por %p198_p7, %p42_p8  ;;  %p204_p12 = scmp.eq.s32.totalorder %s1573_s17, 1 }
  0x56   : > { %p2193_p11 = por %p3297_p10, %p48_p5  ;;  %p1783_p1 = scmp.lt.s32.totalorder %s2020_s29, 2 }
  0x57   : > { %s3299_s12 = scalar_select %p2197_p6, 1, 0 }
  0x58   : > { %s282_s16 = sand.u32 1, %s2016_s28   ;;  %p2203_p3 = por %p204_p12, %p48_p5 }
  0x59   : > { %s1728_s20 = smul.u32 24, %s282_s16  ;;  %p2207_p4 = pnand %p1783_p1, %p44_p9 }
  0x5a   : > { %s3300_s18 = scalar_select %p2203_p3, 1, 0 }
  0x5b   : > { %s1726_s22 = smul.u32 384, %s2020_s29  ;;  %s286_s6 = scalar_lea.vmem [#allocation3], %s1728_s20 }
  0x5c   : > { %s293_s17 = sshll.u32 %s286_s6, 4  ;;  %s2219_s14 = scalar_lea.sflag [#allocation4], %s282_s16  ;;  %s2217_s17 = int_to_ptr.vmem [resolvable:$true] %s293_s17 }
  0x5d   : > { %s2215_s25 = scalar_lea.hbm %s3266_s0, %s1726_s22  ;;  %p1906_p8 = pneg %p2207_p4 }
  0x5e   : > { %s1904_s30 = scalar_lea.hbm %s2215_s25, 384  ;;  %s1909_s24 = scalar_lea.hbm %s3266_s0, 768 }
  0x5f   : > { %p1905_p13 = scmp.ne.s32.totalorder %s2215_s25, %s1904_s30  ;;  %p1910_p5 = scmp.lt.u32.totalorder %s2215_s25, %s3266_s0 }
  0x60   : > { %p1911_p7 = scmp.lt.u32.totalorder %s1909_s24, %s1904_s30  ;;  %p1913_p10 = scmp.lt.u32.totalorder %s1904_s30, %s2215_s25 }
  0x61   : > { %p1907_p0 = pnand %p1906_p8, %p1905_p13 }
  0x62   : > { %p1912_p9 = por %p1911_p7, %p1910_p5 }
  0x63   : > { %p1908_p2 = pneg %p1907_p0 }
  0x64   : > { %p1914_p12 = por %p1913_p10, %p1912_p9 }
  0x66   : > { %p1915_p1 = pnand %p1914_p12, %p1908_p2 }
  0x68   : > { %1918 = shalt.err (!%p1915_p1)
}
  0x69   : > { %s1919_s16 = scalar_lea.vmem %s2217_s17, 384  ;;  %s2029_s20 = smov [#allocation3]  }
  0x6a   : > { %p1920_p13 = scmp.ne.s32.totalorder %s2217_s17, %s1919_s16  ;;  %s1924_s6 = sshll.u32 %s2029_s20, 4  ;;  %s1925_s6 = int_to_ptr.vmem [resolvable:$false] %s1924_s6 }
  0x6b   : > { %s1926_s13 = scalar_lea.vmem %s1925_s6, 768  ;;  %p1927_p6 = scmp.lt.s32.totalorder %s2217_s17, %s1925_s6 }
  0x6c   : > { %p1922_p0 = pnand %p1920_p13, %p1906_p8  ;;  %p1928_p5 = scmp.lt.s32.totalorder %s1926_s13, %s1919_s16 }
  0x6e   : > { %p1923_p3 = pneg %p1922_p0  ;;  %p1929_p7 = por %p1928_p5, %p1927_p6 }
  0x70   : > { %p1930_p9 = pnand %p1929_p7, %p1923_p3 }
  0x72   : > { %1933 = shalt.err (!%p1930_p9)
}
  0x73   : > { %s3302_s15 = smov 8   ;;  %s3303_s30 = smov 128  }
  0x74   : > { %1773 = dma.hbm_to_vmem [thread:$0]  (!%p2207_p4), %s2215_s25, 384, %s2217_s17, %s2219_s14, %s3303_s30, %s3303_s30, %s3302_s15  }
  0x75   : > { %p3304_p8 = scmp.ne.s32.totalorder %s3294_s10, 0 }
  0x77   : > { %305 = sbr.rel (%p3304_p8) target bundleno = 406 (0x196), region = 48 }
  0x7e   : > { %s2253_s22 = sand.u32 1, %s2012_s27  }
  0x7f   : > { %s1729_s23 = smul.u32 24, %s2253_s22  ;;  %s308_s24 = scalar_lea.sflag [#allocation4], %s2253_s22 }
  0x81   : > { %s311_s21 = scalar_lea.vmem [#allocation3], %s1729_s23 }
  0x82   : > { %1979 = dma.done.wait (%p2193_p11), %s308_s24, 384  }
  0x83   : > { %1981 = vsyncadd (%p2193_p11), %s308_s24, 4294966912  ;;  %p3305_p6 = scmp.eq.s32.totalorder %s2100_s9, 0 }
  0x85   : > { %1983 = dma.done.wait (%p3305_p6), [#allocation7], 16   ;;  %p3306_p3 = pmov %p3305_p6 }
  0x87   : > { %1985 = vsyncadd (%p3306_p3), [#allocation7], 4294967280  ;;  %p3307_p4 = pmov %p3306_p3 }
  0x88   : > { %p3308_p2 = pmov %p3306_p3 }
  0x89   : > { %1987 = dma.done.wait (%p3307_p4), [#allocation10], 16  }
  0x8a   : > { %1989 = vsyncadd (%p3308_p2), [#allocation10], 4294967280  ;;  %p3309_p10 = pmov %p3308_p2 }
  0x8b   : > { %p3310_p12 = pmov %p3308_p2 }
  0x8c   : > { %1991 = dma.done.wait (%p3309_p10), [#allocation6], 256  }
  0x8d   : > { %1993 = vsyncadd (%p3310_p12), [#allocation6], 4294967040  ;;  %p3311_p11 = pmov %p3308_p2 }
  0x8e   : > { %p3312_p1 = pmov %p3308_p2 }
  0x8f   : > { %1995 = dma.done.wait (%p3311_p11), [#allocation10], 16  }
  0x90   : > { %1997 = vsyncadd (%p3312_p1), [#allocation10], 4294967280  ;;  %p3313_p13 = pmov %p3312_p1 }
  0x91   : > { %p3314_p0 = pmov %p3312_p1 }
  0x92   : > { %1999 = dma.done.wait (%p3313_p13), [#allocation14], 16  }
  0x93   : > { %2001 = vsyncadd (%p3314_p0), [#allocation14], 4294967280 }
  0x94   : > { %336 = sfence }
  0x95   : > { %s368_s10 = sld [smem:[#allocation8]]  ;;  %s1588_s25 = sld [smem:[#allocation8 + $0x1]]  ;;  %v2283_v0 = vld [vmem:[%s311_s21] sm:$0xff]  ;;  %v2285_v1 = vld [vmem:[%s311_s21 + $0x8] sm:$0xff]  ;;  %v2287_v2 = vld [vmem:[%s311_s21 + $0x10] sm:$0xff] }
  0x96   : > { %s373_s11 = sld [smem:[#allocation9]]  ;;  %s1589_s17 = sld [smem:[#allocation9 + $0x1]] }
  0x97   : > { %s1590_s14 = sld [smem:[#allocation8 + $0x2]]  ;;  %s2289_s20 = sld [smem:[#allocation8 + $0x3]] }
  0x98   : > { %s1591_s16 = sld [smem:[#allocation9 + $0x2]]  ;;  %s2294_s6 = sld [smem:[#allocation9 + $0x3]] }
  0x99   : > { %s2296_s13 = sld [smem:[#allocation8 + $0x4]]  ;;  %s2305_s30 = sld [smem:[#allocation8 + $0x5]] }
  0x9a   : > { %s2298_s15 = sld [smem:[#allocation9 + $0x4]]  ;;  %s2307_s24 = sld [smem:[#allocation9 + $0x5]] }
  0x9b   : > { %v369_v3 = vstv %s368_s10  ;;  %v382_v8 = vstv %s1588_s25  ;;  %s2319_s21 = sld [smem:[#allocation8 + $0x6]]  ;;  %s2341_s25 = sld [smem:[#allocation9 + $0x7]] }
  0x9c   : > { %v370_v4 = vmul.f32 %v369_v3, %v2283_v0  ;;  %v371_v5 = vmul.f32 %v369_v3, %v2285_v1  ;;  %v372_v6 = vmul.f32 %v369_v3, %v2287_v2  ;;  %v374_v7 = vstv %s373_s11  ;;  %s2321_s10 = sld [smem:[#allocation9 + $0x6]]  ;;  %s2339_s11 = sld [smem:[#allocation8 + $0x7]] }
  0x9d   : > { %v387_v9 = vstv %s1589_s17  ;;  %v395_v10 = vstv %s1590_s14  ;;  %v383_v14 = vmul.f32 %v382_v8, %v2283_v0  ;;  %v384_v15 = vmul.f32 %v382_v8, %v2285_v1  ;;  %s2348_s17 = sld [smem:[#allocation8 + $0x8]]  ;;  %p3368_p7 = scmp.ne.s32.totalorder %s3299_s12, 0 }
  0x9e   : > { %v375_v11 = vadd.f32 %v374_v7, %v370_v4  ;;  %v376_v12 = vadd.f32 %v374_v7, %v371_v5  ;;  %v377_v13 = vadd.f32 %v374_v7, %v372_v6  ;;  %v385_v16 = vmul.f32 %v382_v8, %v2287_v2  ;;  %s2358_s14 = sld [smem:[#allocation9 + $0x8]] }
  0x9f   : > { %v396_v17 = vmul.f32 %v395_v10, %v2283_v0  ;;  %v397_v18 = vmul.f32 %v395_v10, %v2285_v1  ;;  %v388_v22 = vadd.f32 %v387_v9, %v383_v14  ;;  %v389_v23 = vadd.f32 %v387_v9, %v384_v15 }
  0xa0   : > { %v2309_v19 = vmax.f32 %v375_v11, 0.0  ;;  %v2311_v20 = vmax.f32 %v376_v12, 0.0  ;;  %v2313_v21 = vmax.f32 %v377_v13, 0.0  ;;  %v390_v24 = vadd.f32 %v387_v9, %v385_v16 }
  0xa1   : > { %v398_v25 = vmul.f32 %v395_v10, %v2287_v2  ;;  %v400_v26 = vstv %s1591_s16  ;;  %v2316_v27 = vmax.f32 %v388_v22, 0.0  ;;  %v408_v30 = vstv %s2289_s20  ;;  %s2365_s16 = sld [smem:[#allocation8 + $0x9]] }
  0xa2   : > { %v401_v28 = vadd.f32 %v400_v26, %v396_v17  ;;  %v402_v29 = vadd.f32 %v400_v26, %v397_v18  ;;  %v2323_v31 = vmax.f32 %v389_v23, 0.0  ;;  %v2325_v32 = vmax.f32 %v390_v24, 0.0  ;;  %s2367_s20 = sld [smem:[#allocation9 + $0x9]] }
  0xa3   : > { %v403_v33 = vadd.f32 %v400_v26, %v398_v25  ;;  %v409_v34 = vmul.f32 %v408_v30, %v2283_v0  ;;  %v410_v37 = vmul.f32 %v408_v30, %v2285_v1  ;;  %v411_v38 = vmul.f32 %v408_v30, %v2287_v2 }
  0xa4   : > { %v2328_v35 = vmax.f32 %v401_v28, 0.0  ;;  %v2330_v36 = vmax.f32 %v402_v29, 0.0  ;;  %v413_v40 = vstv %s2294_s6  ;;  %v421_v41 = vstv %s2296_s13  ;;  %s2382_s6 = sld [smem:[#allocation11]]  ;;  %s2384_s13 = sld [smem:[#allocation11 + $0x1]] }
  0xa5   : > { %v2334_v39 = vmax.f32 %v403_v33, 0.0  ;;  %v426_v42 = vstv %s2298_s15  ;;  %v414_v43 = vadd.f32 %v413_v40, %v409_v34  ;;  %v415_v44 = vadd.f32 %v413_v40, %v410_v37  ;;  %s2400_s15 = sld [smem:[#allocation11 + $0x2]] }
  0xa6   : > { %v416_v45 = vadd.f32 %v413_v40, %v411_v38  ;;  %v422_v46 = vmul.f32 %v421_v41, %v2283_v0  ;;  %v423_v47 = vmul.f32 %v421_v41, %v2285_v1  ;;  %v424_v48 = vmul.f32 %v421_v41, %v2287_v2 }
  0xa7   : > { %v434_v49 = vstv %s2305_s30  ;;  %v439_v50 = vstv %s2307_s24  ;;  %v2350_v51 = vmax.f32 %v414_v43, 0.0  ;;  %v2352_v52 = vmax.f32 %v415_v44, 0.0  ;;  %s2402_s30 = sld [smem:[#allocation11 + $0x3]]  ;;  %s2416_s24 = sld [smem:[#allocation11 + $0x4]] }
  0xa8   : > { %v2354_v53 = vmax.f32 %v416_v45, 0.0  ;;  %v427_v54 = vadd.f32 %v426_v42, %v422_v46  ;;  %v428_v55 = vadd.f32 %v426_v42, %v423_v47  ;;  %v429_v56 = vadd.f32 %v426_v42, %v424_v48 }
  0xa9   : > { %v435_v57 = vmul.f32 %v434_v49, %v2283_v0  ;;  %v436_v58 = vmul.f32 %v434_v49, %v2285_v1  ;;  %v437_v60 = vmul.f32 %v434_v49, %v2287_v2  ;;  %v447_v61 = vstv %s2319_s21  ;;  %s2427_s21 = sld [smem:[#allocation11 + $0x5]] }
  0xaa   : > { %v2360_v59 = vmax.f32 %v427_v54, 0.0  ;;  %v452_v62 = vstv %s2321_s10  ;;  %v2369_v63 = vmax.f32 %v428_v55, 0.0  ;;  %v2371_v3 = vmax.f32 %v429_v56, 0.0  ;;  %s2429_s10 = sld [smem:[#allocation11 + $0x6]] }
  0xab   : > { %v440_v4 = vadd.f32 %v439_v50, %v435_v57  ;;  %v441_v5 = vadd.f32 %v439_v50, %v436_v58  ;;  %v442_v6 = vadd.f32 %v439_v50, %v437_v60  ;;  %v448_v7 = vmul.f32 %v447_v61, %v2283_v0 }
  0xac   : > { %v449_v8 = vmul.f32 %v447_v61, %v2285_v1  ;;  %v450_v9 = vmul.f32 %v447_v61, %v2287_v2  ;;  %v460_v12 = vstv %s2339_s11  ;;  %v465_v13 = vstv %s2341_s25  ;;  %s2445_s11 = sld [smem:[#allocation11 + $0x7]]  ;;  %s2447_s25 = sld [smem:[#allocation11 + $0x8]] }
  0xad   : > { %v2376_v10 = vmax.f32 %v440_v4, 0.0  ;;  %v2378_v11 = vmax.f32 %v441_v5, 0.0  ;;  %v2386_v14 = vmax.f32 %v442_v6, 0.0  ;;  %v453_v15 = vadd.f32 %v452_v62, %v448_v7 }
  0xae   : > { %v454_v16 = vadd.f32 %v452_v62, %v449_v8  ;;  %v455_v17 = vadd.f32 %v452_v62, %v450_v9  ;;  %v461_v18 = vmul.f32 %v460_v12, %v2283_v0  ;;  %v462_v22 = vmul.f32 %v460_v12, %v2285_v1 }
  0xaf   : > { %v463_v23 = vmul.f32 %v460_v12, %v2287_v2  ;;  %v473_v24 = vstv %s2348_s17  ;;  %v2392_v25 = vmax.f32 %v453_v15, 0.0  ;;  %v478_v40 = vstv %s2358_s14  ;;  %s2456_s17 = sld [smem:[#allocation11 + $0x9]]  ;;  %s2463_s14 = sld [smem:[#allocation12]] }
  0xb0   : > { %v2394_v26 = vmax.f32 %v454_v16, 0.0  ;;  %v2396_v28 = vmax.f32 %v455_v17, 0.0  ;;  %v474_v29 = vmul.f32 %v473_v24, %v2283_v0  ;;  %v466_v30 = vadd.f32 %v465_v13, %v461_v18 }
  0xb1   : > { %v467_v33 = vadd.f32 %v465_v13, %v462_v22  ;;  %v468_v34 = vadd.f32 %v465_v13, %v463_v23  ;;  %v475_v37 = vmul.f32 %v473_v24, %v2285_v1  ;;  %v476_v38 = vmul.f32 %v473_v24, %v2287_v2 }
  0xb2   : > { %v486_v41 = vstv %s2365_s16  ;;  %v491_v42 = vstv %s2367_s20  ;;  %v2408_v43 = vmax.f32 %v466_v30, 0.0  ;;  %v479_v46 = vadd.f32 %v478_v40, %v474_v29  ;;  %s2465_s16 = sld [smem:[#allocation11 + $0x80]]  ;;  %s2472_s20 = sld [smem:[#allocation11 + $0x81]] }
  0xb3   : > { %v2410_v44 = vmax.f32 %v467_v33, 0.0  ;;  %v2412_v45 = vmax.f32 %v468_v34, 0.0  ;;  %v480_v47 = vadd.f32 %v478_v40, %v475_v37  ;;  %v481_v48 = vadd.f32 %v478_v40, %v476_v38 }
  0xb4   : > { %v487_v49 = vmul.f32 %v486_v41, %v2283_v0  ;;  %v488_v50 = vmul.f32 %v486_v41, %v2285_v1  ;;  %v2418_v54 = vmax.f32 %v479_v46, 0.0  ;;  %v489_v55 = vmul.f32 %v486_v41, %v2287_v2 }
  0xb5   : > { %v499_v56 = vstv %s2382_s6  ;;  %v504_v57 = vstv %s2384_s13  ;;  %v2423_v58 = vmax.f32 %v480_v47, 0.0  ;;  %v2425_v60 = vmax.f32 %v481_v48, 0.0  ;;  %s2474_s6 = sld [smem:[#allocation11 + $0x82]]  ;;  %s2486_s13 = sld [smem:[#allocation11 + $0x83]] }
  0xb6   : > { %v492_v61 = vadd.f32 %v491_v42, %v487_v49  ;;  %v493_v62 = vadd.f32 %v491_v42, %v488_v50  ;;  %v494_v0 = vadd.f32 %v491_v42, %v489_v55  ;;  %v500_v1 = vmul.f32 %v499_v56, %v2309_v19 }
  0xb7   : > { %v501_v4 = vmul.f32 %v499_v56, %v2311_v20  ;;  %v502_v2 = vmul.f32 %v499_v56, %v2313_v21  ;;  %v505_v7 = vmul.f32 %v504_v57, %v2316_v27  ;;  %v506_v8 = vmul.f32 %v504_v57, %v2323_v31 }
  0xb8   : > { %v2434_v5 = vmax.f32 %v492_v61, 0.0  ;;  %v2436_v6 = vmax.f32 %v493_v62, 0.0  ;;  %v2440_v9 = vmax.f32 %v494_v0, 0.0  ;;  %v507_v12 = vmul.f32 %v504_v57, %v2325_v32 }
  0xb9   : > { %v512_v13 = vstv %s2400_s15  ;;  %v520_v15 = vstv %s2402_s30  ;;  %v508_v16 = vadd.f32 %v505_v7, %v500_v1  ;;  %v509_v17 = vadd.f32 %v506_v8, %v501_v4  ;;  %s2496_s15 = sld [smem:[#allocation11 + $0x84]]  ;;  %s2500_s30 = sld [smem:[#allocation11 + $0x85]] }
  0xba   : > { %v513_v18 = vmul.f32 %v512_v13, %v2328_v35  ;;  %v514_v22 = vmul.f32 %v512_v13, %v2330_v36  ;;  %v510_v23 = vadd.f32 %v507_v12, %v502_v2  ;;  %v515_v24 = vmul.f32 %v512_v13, %v2334_v39 }
  0xbb   : > { %v521_v29 = vmul.f32 %v520_v15, %v2350_v51  ;;  %v522_v30 = vmul.f32 %v520_v15, %v2352_v52  ;;  %v523_v37 = vmul.f32 %v520_v15, %v2354_v53  ;;  %v528_v38 = vstv %s2416_s24  ;;  %s2505_s24 = sld [smem:[#allocation11 + $0x86]] }
  0xbc   : > { %v516_v33 = vadd.f32 %v513_v18, %v508_v16  ;;  %v517_v34 = vadd.f32 %v514_v22, %v509_v17  ;;  %v518_v40 = vadd.f32 %v515_v24, %v510_v23  ;;  %v529_v41 = vmul.f32 %v528_v38, %v2360_v59 }
  0xbd   : > { %v530_v42 = vmul.f32 %v528_v38, %v2369_v63  ;;  %v531_v46 = vmul.f32 %v528_v38, %v2371_v3  ;;  %v536_v49 = vstv %s2427_s21  ;;  %v544_v50 = vstv %s2429_s10  ;;  %s2507_s21 = sld [smem:[#allocation11 + $0x87]]  ;;  %s2518_s10 = sld [smem:[#allocation11 + $0x88]] }
  0xbe   : > { %v524_v47 = vadd.f32 %v521_v29, %v516_v33  ;;  %v525_v48 = vadd.f32 %v522_v30, %v517_v34  ;;  %v526_v55 = vadd.f32 %v523_v37, %v518_v40  ;;  %v537_v56 = vmul.f32 %v536_v49, %v2376_v10 }
  0xbf   : > { %v538_v57 = vmul.f32 %v536_v49, %v2378_v11  ;;  %v539_v61 = vmul.f32 %v536_v49, %v2386_v14  ;;  %v545_v1 = vmul.f32 %v544_v50, %v2392_v25  ;;  %v546_v4 = vmul.f32 %v544_v50, %v2394_v26 }
  0xc0   : > { %v532_v62 = vadd.f32 %v529_v41, %v524_v47  ;;  %v533_v0 = vadd.f32 %v530_v42, %v525_v48  ;;  %v534_v2 = vadd.f32 %v531_v46, %v526_v55  ;;  %v547_v7 = vmul.f32 %v544_v50, %v2396_v28 }
  0xc1   : > { %v552_v8 = vstv %s2445_s11  ;;  %v560_v12 = vstv %s2447_s25  ;;  %v568_v34 = vstv %s2456_s17  ;;  %v576_v47 = vstv %s2463_s14  ;;  %s2527_s11 = sld [smem:[#allocation11 + $0x89]]  ;;  %s2537_s17 = sld [smem:[#allocation11 + $0x100]] }
  0xc2   : > { %v540_v13 = vadd.f32 %v537_v56, %v532_v62  ;;  %v541_v15 = vadd.f32 %v538_v57, %v533_v0  ;;  %v553_v16 = vmul.f32 %v552_v8, %v2408_v43  ;;  %v554_v17 = vmul.f32 %v552_v8, %v2410_v44  ;;  %s2529_s25 = sld [smem:[#allocation12 + $0x1]] }
  0xc3   : > { %v542_v18 = vadd.f32 %v539_v61, %v534_v2  ;;  %v555_v22 = vmul.f32 %v552_v8, %v2412_v45  ;;  %v561_v23 = vmul.f32 %v560_v12, %v2418_v54  ;;  %v562_v24 = vmul.f32 %v560_v12, %v2423_v58  ;;  %s2539_s14 = sld [smem:[#allocation11 + $0x101]] }
  0xc4   : > { %v548_v29 = vadd.f32 %v545_v1, %v540_v13  ;;  %v549_v30 = vadd.f32 %v546_v4, %v541_v15  ;;  %v563_v33 = vmul.f32 %v560_v12, %v2425_v60  ;;  %v569_v38 = vmul.f32 %v568_v34, %v2434_v5 }
  0xc5   : > { %v550_v37 = vadd.f32 %v547_v7, %v542_v18  ;;  %v570_v40 = vmul.f32 %v568_v34, %v2436_v6  ;;  %v571_v41 = vmul.f32 %v568_v34, %v2440_v9  ;;  %v584_v48 = vstv %s2465_s16  ;;  %s2548_s16 = sld [smem:[#allocation11 + $0x102]] }
  0xc6   : > { %v556_v42 = vadd.f32 %v553_v16, %v548_v29  ;;  %v557_v46 = vadd.f32 %v554_v17, %v549_v30  ;;  %v585_v50 = vmul.f32 %v584_v48, %v2309_v19  ;;  %v586_v55 = vmul.f32 %v584_v48, %v2311_v20 }
  0xc7   : > { %v558_v49 = vadd.f32 %v555_v22, %v550_v37  ;;  %v587_v56 = vmul.f32 %v584_v48, %v2313_v21  ;;  %v589_v62 = vstv %s2472_s20  ;;  %v597_v0 = vstv %s2474_s6  ;;  %s2558_s20 = sld [smem:[#allocation11 + $0x103]]  ;;  %s2565_s6 = sld [smem:[#allocation11 + $0x104]] }
  0xc8   : > { %v564_v57 = vadd.f32 %v561_v23, %v556_v42  ;;  %v565_v61 = vadd.f32 %v562_v24, %v557_v46  ;;  %v590_v4 = vmul.f32 %v589_v62, %v2316_v27  ;;  %v591_v2 = vmul.f32 %v589_v62, %v2323_v31 }
  0xc9   : > { %v566_v1 = vadd.f32 %v563_v33, %v558_v49  ;;  %v592_v7 = vmul.f32 %v589_v62, %v2325_v32  ;;  %v598_v13 = vmul.f32 %v597_v0, %v2328_v35  ;;  %v599_v15 = vmul.f32 %v597_v0, %v2330_v36 }
  0xca   : > { %v572_v8 = vadd.f32 %v569_v38, %v564_v57  ;;  %v573_v12 = vadd.f32 %v570_v40, %v565_v61  ;;  %v593_v17 = vadd.f32 %v590_v4, %v585_v50  ;;  %v594_v18 = vadd.f32 %v591_v2, %v586_v55 }
  0xcb   : > { %v574_v16 = vadd.f32 %v571_v41, %v566_v1  ;;  %v595_v22 = vadd.f32 %v592_v7, %v587_v56  ;;  %v600_v29 = vmul.f32 %v597_v0, %v2334_v39  ;;  %v605_v30 = vstv %s2486_s13  ;;  %s2569_s13 = sld [smem:[#allocation11 + $0x105]] }
  0xcc   : > { %v2511_v23 = vadd.f32 %v576_v47, %v572_v8  ;;  %v2513_v24 = vadd.f32 %v576_v47, %v573_v12  ;;  %v601_v33 = vadd.f32 %v598_v13, %v593_v17  ;;  %v602_v34 = vadd.f32 %v599_v15, %v594_v18 }
  0xcd   : > { %v606_v37 = vmul.f32 %v605_v30, %v2350_v51  ;;  %v2520_v38 = vadd.f32 %v576_v47, %v574_v16  ;;  %v603_v41 = vadd.f32 %v600_v29, %v595_v22  ;;  %v607_v42 = vmul.f32 %v605_v30, %v2352_v52 }
  0xce   : > { %v608_v48 = vmul.f32 %v605_v30, %v2354_v53  ;;  %v613_v50 = vstv %s2496_s15  ;;  %v621_v62 = vstv %s2500_s30  ;;  %v629_v0 = vstv %s2505_s24  ;;  %s2571_s15 = sld [smem:[#allocation11 + $0x106]]  ;;  %s2584_s30 = sld [smem:[#allocation11 + $0x107]] }
  0xcf   : > { %v609_v49 = vadd.f32 %v606_v37, %v601_v33  ;;  %v610_v55 = vadd.f32 %v607_v42, %v602_v34  ;;  %v614_v47 = vmul.f32 %v613_v50, %v2360_v59  ;;  %v615_v56 = vmul.f32 %v613_v50, %v2369_v63  ;;  %s2586_s24 = sld [smem:[#allocation11 + $0x108]] }
  0xd0   : > { %v616_v57 = vmul.f32 %v613_v50, %v2371_v3  ;;  %v611_v61 = vadd.f32 %v608_v48, %v603_v41  ;;  %v637_v1 = vstv %s2507_s21  ;;  %v622_v7 = vmul.f32 %v621_v62, %v2376_v10  ;;  %s2598_s21 = sld [smem:[#allocation11 + $0x109]] }
  0xd1   : > { %v617_v4 = vadd.f32 %v614_v47, %v609_v49  ;;  %v618_v2 = vadd.f32 %v615_v56, %v610_v55  ;;  %v623_v8 = vmul.f32 %v621_v62, %v2378_v11  ;;  %v624_v13 = vmul.f32 %v621_v62, %v2386_v14 }
  0xd2   : > { %v619_v12 = vadd.f32 %v616_v57, %v611_v61  ;;  %v630_v15 = vmul.f32 %v629_v0, %v2392_v25  ;;  %v631_v16 = vmul.f32 %v629_v0, %v2394_v26  ;;  %v632_v22 = vmul.f32 %v629_v0, %v2396_v28 }
  0xd3   : > { %v625_v17 = vadd.f32 %v622_v7, %v617_v4  ;;  %v626_v18 = vadd.f32 %v623_v8, %v618_v2  ;;  %v638_v29 = vmul.f32 %v637_v1, %v2408_v43  ;;  %v639_v33 = vmul.f32 %v637_v1, %v2410_v44 }
  0xd4   : > { %v627_v30 = vadd.f32 %v624_v13, %v619_v12  ;;  %v640_v34 = vmul.f32 %v637_v1, %v2412_v45  ;;  %v645_v37 = vstv %s2518_s10  ;;  %v653_v47 = vstv %s2527_s11  ;;  %s2605_s10 = sld [smem:[#allocation12 + $0x2]]  ;;  %s2607_s11 = sld [smem:[#allocation11 + $0x180]] }
  0xd5   : > { %v633_v41 = vadd.f32 %v630_v15, %v625_v17  ;;  %v634_v42 = vadd.f32 %v631_v16, %v626_v18  ;;  %v646_v48 = vmul.f32 %v645_v37, %v2418_v54  ;;  %v647_v49 = vmul.f32 %v645_v37, %v2423_v58 }
  0xd6   : > { %v635_v50 = vadd.f32 %v632_v22, %v627_v30  ;;  %v648_v55 = vmul.f32 %v645_v37, %v2425_v60  ;;  %v661_v56 = vstv %s2529_s25  ;;  %v654_v62 = vmul.f32 %v653_v47, %v2434_v5  ;;  %s2615_s25 = sld [smem:[#allocation11 + $0x181]] }
  0xd7   : > { %v641_v57 = vadd.f32 %v638_v29, %v633_v41  ;;  %v642_v61 = vadd.f32 %v639_v33, %v634_v42  ;;  %v655_v0 = vmul.f32 %v653_v47, %v2436_v6  ;;  %v656_v4 = vmul.f32 %v653_v47, %v2440_v9 }
  0xd8   : > { %v643_v1 = vadd.f32 %v640_v34, %v635_v50  ;;  %v669_v2 = vstv %s2537_s17  ;;  %v674_v7 = vstv %s2539_s14  ;;  %v682_v34 = vstv %s2548_s16  ;;  %s2617_s17 = sld [smem:[#allocation11 + $0x182]]  ;;  %s2629_s14 = sld [smem:[#allocation11 + $0x183]] }
  0xd9   : > { %v649_v8 = vadd.f32 %v646_v48, %v641_v57  ;;  %v650_v12 = vadd.f32 %v647_v49, %v642_v61  ;;  %v670_v13 = vmul.f32 %v669_v2, %v2309_v19  ;;  %v671_v15 = vmul.f32 %v669_v2, %v2311_v20  ;;  %s2639_s16 = sld [smem:[#allocation11 + $0x184]] }
  0xda   : > { %v651_v16 = vadd.f32 %v648_v55, %v643_v1  ;;  %v672_v17 = vmul.f32 %v669_v2, %v2313_v21  ;;  %v675_v18 = vmul.f32 %v674_v7, %v2316_v27  ;;  %v676_v22 = vmul.f32 %v674_v7, %v2323_v31 }
  0xdb   : > { %v657_v29 = vadd.f32 %v654_v62, %v649_v8  ;;  %v658_v30 = vadd.f32 %v655_v0, %v650_v12  ;;  %v677_v33 = vmul.f32 %v674_v7, %v2325_v32  ;;  %v683_v48 = vmul.f32 %v682_v34, %v2328_v35 }
  0xdc   : > { %v659_v37 = vadd.f32 %v656_v4, %v651_v16  ;;  %v678_v41 = vadd.f32 %v675_v18, %v670_v13  ;;  %v679_v42 = vadd.f32 %v676_v22, %v671_v15  ;;  %v684_v47 = vmul.f32 %v682_v34, %v2330_v36 }
  0xdd   : > { %v2579_v49 = vadd.f32 %v661_v56, %v657_v29  ;;  %v2581_v50 = vadd.f32 %v661_v56, %v658_v30  ;;  %v680_v55 = vadd.f32 %v677_v33, %v672_v17  ;;  %v685_v61 = vmul.f32 %v682_v34, %v2334_v39 }
  0xde   : > { %v686_v62 = vadd.f32 %v683_v48, %v678_v41  ;;  %v690_v0 = vstv %s2558_s20  ;;  %v2591_v1 = vadd.f32 %v661_v56, %v659_v37  ;;  %v687_v2 = vadd.f32 %v684_v47, %v679_v42  ;;  %s2643_s20 = sld [smem:[#allocation11 + $0x185]] }
  0xdf   : > { %v691_v7 = vmul.f32 %v690_v0, %v2350_v51  ;;  %v688_v12 = vadd.f32 %v685_v61, %v680_v55  ;;  %v692_v13 = vmul.f32 %v690_v0, %v2352_v52  ;;  %v693_v15 = vmul.f32 %v690_v0, %v2354_v53 }
  0xe0   : > { %v698_v17 = vstv %s2565_s6  ;;  %v706_v18 = vstv %s2569_s13  ;;  %v714_v22 = vstv %s2571_s15  ;;  %v754_v8 = vstv %s2607_s11  ;;  %s2648_s6 = sld [smem:[#allocation11 + $0x186]]  ;;  %s2650_s13 = sld [smem:[#allocation11 + $0x187]] }
  0xe1   : > { %v694_v16 = vadd.f32 %v691_v7, %v686_v62  ;;  %v695_v56 = vadd.f32 %v692_v13, %v687_v2  ;;  %v696_v29 = vadd.f32 %v693_v15, %v688_v12  ;;  %v699_v30 = vmul.f32 %v698_v17, %v2360_v59  ;;  %s2662_s15 = sld [smem:[#allocation11 + $0x188]]  ;;  %s2692_s11 = sld [smem:[#allocation11 + $0x202]] }
  0xe2   : > { %v700_v33 = vmul.f32 %v698_v17, %v2369_v63  ;;  %v701_v34 = vmul.f32 %v698_v17, %v2371_v3  ;;  %v707_v37 = vmul.f32 %v706_v18, %v2376_v10  ;;  %v708_v41 = vmul.f32 %v706_v18, %v2378_v11 }
  0xe3   : > { %v709_v42 = vmul.f32 %v706_v18, %v2386_v14  ;;  %v702_v48 = vadd.f32 %v699_v30, %v694_v16  ;;  %v715_v47 = vmul.f32 %v714_v22, %v2392_v25  ;;  %v716_v61 = vmul.f32 %v714_v22, %v2394_v26 }
  0xe4   : > { %v703_v55 = vadd.f32 %v700_v33, %v695_v56  ;;  %v704_v62 = vadd.f32 %v701_v34, %v696_v29  ;;  %v717_v0 = vmul.f32 %v714_v22, %v2396_v28  ;;  %v722_v2 = vstv %s2584_s30  ;;  %s2671_s30 = sld [smem:[#allocation11 + $0x189]] }
  0xe5   : > { %v730_v7 = vstv %s2586_s24  ;;  %v710_v12 = vadd.f32 %v707_v37, %v702_v48  ;;  %v723_v15 = vmul.f32 %v722_v2, %v2408_v43  ;;  %v724_v16 = vmul.f32 %v722_v2, %v2410_v44  ;;  %s2673_s24 = sld [smem:[#allocation12 + $0x3]] }
  0xe6   : > { %v711_v13 = vadd.f32 %v708_v41, %v703_v55  ;;  %v712_v17 = vadd.f32 %v709_v42, %v704_v62  ;;  %v725_v18 = vmul.f32 %v722_v2, %v2412_v45  ;;  %v731_v56 = vmul.f32 %v730_v7, %v2418_v54 }
  0xe7   : > { %v732_v30 = vmul.f32 %v730_v7, %v2423_v58  ;;  %v718_v29 = vadd.f32 %v715_v47, %v710_v12  ;;  %v733_v22 = vmul.f32 %v730_v7, %v2425_v60  ;;  %v738_v34 = vstv %s2598_s21  ;;  %s2681_s21 = sld [smem:[#allocation11 + $0x200]] }
  0xe8   : > { %v719_v33 = vadd.f32 %v716_v61, %v711_v13  ;;  %v720_v37 = vadd.f32 %v717_v0, %v712_v17  ;;  %v739_v41 = vmul.f32 %v738_v34, %v2434_v5  ;;  %v740_v42 = vmul.f32 %v738_v34, %v2436_v6 }
  0xe9   : > { %v741_v48 = vmul.f32 %v738_v34, %v2440_v9  ;;  %v726_v55 = vadd.f32 %v723_v15, %v718_v29  ;;  %v746_v2 = vstv %s2605_s10  ;;  %v755_v61 = vmul.f32 %v754_v8, %v2309_v19  ;;  %s2683_s10 = sld [smem:[#allocation11 + $0x201]] }
  0xea   : > { %v727_v62 = vadd.f32 %v724_v16, %v719_v33  ;;  %v728_v47 = vadd.f32 %v725_v18, %v720_v37  ;;  %v756_v7 = vmul.f32 %v754_v8, %v2311_v20  ;;  %v757_v12 = vmul.f32 %v754_v8, %v2313_v21 }
  0xeb   : > { %v734_v0 = vadd.f32 %v731_v56, %v726_v55  ;;  %v759_v17 = vstv %s2615_s25  ;;  %v767_v4 = vstv %s2617_s17  ;;  %v775_v57 = vstv %s2629_s14  ;;  %s2702_s25 = sld [smem:[#allocation11 + $0x203]]  ;;  %s2709_s17 = sld [smem:[#allocation11 + $0x204]] }
  0xec   : > { %v735_v13 = vadd.f32 %v732_v30, %v727_v62  ;;  %v736_v34 = vadd.f32 %v733_v22, %v728_v47  ;;  %v760_v15 = vmul.f32 %v759_v17, %v2316_v27  ;;  %v761_v16 = vmul.f32 %v759_v17, %v2323_v31  ;;  %s2713_s14 = sld [smem:[#allocation11 + $0x205]] }
  0xed   : > { %v762_v18 = vmul.f32 %v759_v17, %v2325_v32  ;;  %v742_v8 = vadd.f32 %v739_v41, %v734_v0  ;;  %v768_v56 = vmul.f32 %v767_v4, %v2328_v35  ;;  %v769_v30 = vmul.f32 %v767_v4, %v2330_v36 }
  0xee   : > { %v743_v29 = vadd.f32 %v740_v42, %v735_v13  ;;  %v744_v33 = vadd.f32 %v741_v48, %v736_v34  ;;  %v763_v37 = vadd.f32 %v760_v15, %v755_v61  ;;  %v764_v22 = vadd.f32 %v761_v16, %v756_v7 }
  0xef   : > { %v765_v55 = vadd.f32 %v762_v18, %v757_v12  ;;  %v2654_v62 = vadd.f32 %v746_v2, %v742_v8  ;;  %v770_v17 = vmul.f32 %v767_v4, %v2334_v39  ;;  %v776_v0 = vmul.f32 %v775_v57, %v2350_v51 }
  0xf0   : > { %v2656_v47 = vadd.f32 %v746_v2, %v743_v29  ;;  %v771_v41 = vadd.f32 %v768_v56, %v763_v37  ;;  %v772_v42 = vadd.f32 %v769_v30, %v764_v22  ;;  %v2664_v48 = vadd.f32 %v746_v2, %v744_v33 }
  0xf1   : > { %3315 = vst [vmem:[#allocation23_spill] sm:$0xff] %v2654_v62  ;;  %v773_v7 = vadd.f32 %v770_v17, %v765_v55  ;;  %v777_v12 = vmul.f32 %v775_v57, %v2352_v52  ;;  %v778_v13 = vmul.f32 %v775_v57, %v2354_v53  ;;  %v783_v15 = vstv %s2639_s16  ;;  %s2715_s16 = sld [smem:[#allocation11 + $0x206]] }
  0xf2   : > { %3316 = vst [vmem:[#allocation24_spill] sm:$0xff] %v2656_v47  ;;  %3317 = vst [vmem:[#allocation25_spill] sm:$0xff] %v2664_v48  ;;  %v779_v34 = vadd.f32 %v776_v0, %v771_v41  ;;  %v784_v2 = vmul.f32 %v783_v15, %v2360_v59  ;;  %v785_v18 = vmul.f32 %v783_v15, %v2369_v63  ;;  %v791_v56 = vstv %s2643_s20  ;;  %s2728_s20 = sld [smem:[#allocation11 + $0x207]] }
  0xf3   : > { %v780_v16 = vadd.f32 %v777_v12, %v772_v42  ;;  %v786_v8 = vmul.f32 %v783_v15, %v2371_v3  ;;  %v781_v29 = vadd.f32 %v778_v13, %v773_v7  ;;  %v799_v30 = vstv %s2648_s6  ;;  %s2730_s6 = sld [smem:[#allocation11 + $0x208]] }
  0xf4   : > { %v807_v33 = vstv %s2650_s13  ;;  %v787_v57 = vadd.f32 %v784_v2, %v779_v34  ;;  %v792_v22 = vmul.f32 %v791_v56, %v2376_v10  ;;  %v793_v55 = vmul.f32 %v791_v56, %v2378_v11  ;;  %s2742_s13 = sld [smem:[#allocation11 + $0x209]] }
  0xf5   : > { %v788_v37 = vadd.f32 %v785_v18, %v780_v16  ;;  %v789_v17 = vadd.f32 %v786_v8, %v781_v29  ;;  %v794_v41 = vmul.f32 %v791_v56, %v2386_v14  ;;  %v800_v42 = vmul.f32 %v799_v30, %v2392_v25 }
  0xf6   : > { %v801_v0 = vmul.f32 %v799_v30, %v2394_v26  ;;  %v795_v7 = vadd.f32 %v792_v22, %v787_v57  ;;  %v802_v13 = vmul.f32 %v799_v30, %v2396_v28  ;;  %v808_v34 = vmul.f32 %v807_v33, %v2408_v43 }
  0xf7   : > { %v796_v12 = vadd.f32 %v793_v55, %v788_v37  ;;  %v797_v15 = vadd.f32 %v794_v41, %v789_v17  ;;  %v809_v16 = vmul.f32 %v807_v33, %v2410_v44  ;;  %v810_v2 = vmul.f32 %v807_v33, %v2412_v45 }
  0xf8   : > { %v815_v18 = vstv %s2662_s15  ;;  %v803_v8 = vadd.f32 %v800_v42, %v795_v7  ;;  %v823_v22 = vstv %s2671_s30  ;;  %v831_v55 = vstv %s2673_s24  ;;  %s2749_s15 = sld [smem:[#allocation12 + $0x4]]  ;;  %s2751_s30 = sld [smem:[#allocation11 + $0x280]] }
  0xf9   : > { %v804_v29 = vadd.f32 %v801_v0, %v796_v12  ;;  %v816_v56 = vmul.f32 %v815_v18, %v2418_v54  ;;  %v817_v57 = vmul.f32 %v815_v18, %v2423_v58  ;;  %v805_v37 = vadd.f32 %v802_v13, %v797_v15  ;;  %s2759_s24 = sld [smem:[#allocation11 + $0x281]] }
  0xfa   : > { %v818_v30 = vmul.f32 %v815_v18, %v2425_v60  ;;  %v811_v17 = vadd.f32 %v808_v34, %v803_v8  ;;  %v824_v33 = vmul.f32 %v823_v22, %v2434_v5  ;;  %v825_v4 = vmul.f32 %v823_v22, %v2436_v6 }
  0xfb   : > { %v812_v41 = vadd.f32 %v809_v16, %v804_v29  ;;  %v813_v42 = vadd.f32 %v810_v2, %v805_v37  ;;  %v826_v0 = vmul.f32 %v823_v22, %v2440_v9  ;;  %v839_v7 = vstv %s2681_s21  ;;  %s2761_s21 = sld [smem:[#allocation11 + $0x282]] }
  0xfc   : > { %v844_v12 = vstv %s2683_s10  ;;  %v819_v13 = vadd.f32 %v816_v56, %v811_v17  ;;  %v840_v18 = vmul.f32 %v839_v7, %v2309_v19  ;;  %v841_v61 = vmul.f32 %v839_v7, %v2311_v20  ;;  %s2773_s10 = sld [smem:[#allocation11 + $0x283]] }
  0xfd   : > { %v820_v15 = vadd.f32 %v817_v57, %v812_v41  ;;  %v821_v34 = vadd.f32 %v818_v30, %v813_v42  ;;  %v842_v16 = vmul.f32 %v839_v7, %v2313_v21  ;;  %v845_v2 = vmul.f32 %v844_v12, %v2316_v27 }
  0xfe   : > { %v846_v8 = vmul.f32 %v844_v12, %v2323_v31  ;;  %v827_v29 = vadd.f32 %v824_v33, %v819_v13  ;;  %v847_v56 = vmul.f32 %v844_v12, %v2325_v32  ;;  %v852_v57 = vstv %s2692_s11  ;;  %s2783_s11 = sld [smem:[#allocation11 + $0x284]] }
  0xff   : > { %v828_v37 = vadd.f32 %v825_v4, %v820_v15  ;;  %v829_v22 = vadd.f32 %v826_v0, %v821_v34  ;;  %v848_v17 = vadd.f32 %v845_v2, %v840_v18  ;;  %v853_v46 = vmul.f32 %v852_v57, %v2328_v35 }
 0x100   : > { %v849_v41 = vadd.f32 %v846_v8, %v841_v61  ;;  %v2723_v40 = vadd.f32 %v831_v55, %v827_v29  ;;  %v850_v42 = vadd.f32 %v847_v56, %v842_v16  ;;  %v854_v7 = vmul.f32 %v852_v57, %v2330_v36 }
 0x101   : > { %v2725_v30 = vadd.f32 %v831_v55, %v828_v37  ;;  %v855_v61 = vmul.f32 %v852_v57, %v2334_v39  ;;  %v856_v33 = vadd.f32 %v853_v46, %v848_v17  ;;  %v860_v0 = vstv %s2702_s25  ;;  %s2787_s25 = sld [smem:[#allocation11 + $0x285]] }
 0x102   : > { %3318 = vst [vmem:[#allocation26_spill] sm:$0xff] %v2723_v40  ;;  %v2735_v12 = vadd.f32 %v831_v55, %v829_v22  ;;  %v857_v15 = vadd.f32 %v854_v7, %v849_v41  ;;  %v861_v18 = vmul.f32 %v860_v0, %v2350_v51  ;;  %v862_v2 = vmul.f32 %v860_v0, %v2352_v52 }
 0x103   : > { %3319 = vst [vmem:[#allocation27_spill] sm:$0xff] %v2725_v30  ;;  %v858_v16 = vadd.f32 %v855_v61, %v850_v42  ;;  %v863_v8 = vmul.f32 %v860_v0, %v2354_v53  ;;  %v868_v37 = vstv %s2709_s17  ;;  %v876_v46 = vstv %s2713_s14  ;;  %s2792_s17 = sld [smem:[#allocation11 + $0x286]]  ;;  %s2794_s14 = sld [smem:[#allocation11 + $0x287]] }
 0x104   : > { %3320 = vst [vmem:[#allocation28_spill] sm:$0xff] %v2735_v12  ;;  %v864_v29 = vadd.f32 %v861_v18, %v856_v33  ;;  %v884_v56 = vstv %s2715_s16  ;;  %v865_v55 = vadd.f32 %v862_v2, %v857_v15  ;;  %v869_v22 = vmul.f32 %v868_v37, %v2360_v59  ;;  %s2806_s16 = sld [smem:[#allocation11 + $0x288]] }
 0x105   : > { %v866_v57 = vadd.f32 %v863_v8, %v858_v16  ;;  %v870_v17 = vmul.f32 %v868_v37, %v2369_v63  ;;  %v871_v41 = vmul.f32 %v868_v37, %v2371_v3  ;;  %v877_v42 = vmul.f32 %v876_v46, %v2376_v10 }
 0x106   : > { %v878_v7 = vmul.f32 %v876_v46, %v2378_v11  ;;  %v879_v61 = vmul.f32 %v876_v46, %v2386_v14  ;;  %v872_v33 = vadd.f32 %v869_v22, %v864_v29  ;;  %v885_v15 = vmul.f32 %v884_v56, %v2392_v25 }
 0x107   : > { %v873_v0 = vadd.f32 %v870_v17, %v865_v55  ;;  %v886_v18 = vmul.f32 %v884_v56, %v2394_v26  ;;  %v874_v16 = vadd.f32 %v871_v41, %v866_v57  ;;  %v887_v2 = vmul.f32 %v884_v56, %v2396_v28 }
 0x108   : > { %v892_v8 = vstv %s2728_s20  ;;  %v900_v37 = vstv %s2730_s6  ;;  %v880_v34 = vadd.f32 %v877_v42, %v872_v33  ;;  %v908_v30 = vstv %s2742_s13  ;;  %s2815_s20 = sld [smem:[#allocation11 + $0x289]]  ;;  %s2817_s6 = sld [smem:[#allocation12 + $0x5]] }
 0x109   : > { %v881_v13 = vadd.f32 %v878_v7, %v873_v0  ;;  %v893_v46 = vmul.f32 %v892_v8, %v2408_v43  ;;  %v894_v29 = vmul.f32 %v892_v8, %v2410_v44  ;;  %v882_v55 = vadd.f32 %v879_v61, %v874_v16  ;;  %s2825_s13 = sld [smem:[#allocation11 + $0x300]] }
 0x10a   : > { %v895_v22 = vmul.f32 %v892_v8, %v2412_v45  ;;  %v901_v17 = vmul.f32 %v900_v37, %v2418_v54  ;;  %v902_v4 = vmul.f32 %v900_v37, %v2423_v58  ;;  %v888_v57 = vadd.f32 %v885_v15, %v880_v34 }
 0x10b   : > { %v889_v41 = vadd.f32 %v886_v18, %v881_v13  ;;  %v903_v56 = vmul.f32 %v900_v37, %v2425_v60  ;;  %v890_v42 = vadd.f32 %v887_v2, %v882_v55  ;;  %v909_v7 = vmul.f32 %v908_v30, %v2434_v5 }
 0x10c   : > { %v910_v61 = vmul.f32 %v908_v30, %v2436_v6  ;;  %v911_v33 = vmul.f32 %v908_v30, %v2440_v9  ;;  %v896_v0 = vadd.f32 %v893_v46, %v888_v57  ;;  %v916_v8 = vstv %s2749_s15  ;;  %s2827_s15 = sld [smem:[#allocation11 + $0x301]] }
 0x10d   : > { %v897_v16 = vadd.f32 %v894_v29, %v889_v41  ;;  %v924_v40 = vstv %s2751_s30  ;;  %v898_v34 = vadd.f32 %v895_v22, %v890_v42  ;;  %v929_v55 = vstv %s2759_s24  ;;  %s2836_s30 = sld [smem:[#allocation11 + $0x302]]  ;;  %s2846_s24 = sld [smem:[#allocation11 + $0x303]] }
 0x10e   : > { %v925_v13 = vmul.f32 %v924_v40, %v2309_v19  ;;  %v926_v15 = vmul.f32 %v924_v40, %v2311_v20  ;;  %v927_v18 = vmul.f32 %v924_v40, %v2313_v21  ;;  %v904_v2 = vadd.f32 %v901_v17, %v896_v0 }
 0x10f   : > { %v905_v37 = vadd.f32 %v902_v4, %v897_v16  ;;  %v937_v48 = vstv %s2761_s21  ;;  %v906_v30 = vadd.f32 %v903_v56, %v898_v34  ;;  %v930_v46 = vmul.f32 %v929_v55, %v2316_v27  ;;  %s2853_s21 = sld [smem:[#allocation11 + $0x304]] }
 0x110   : > { %v931_v29 = vmul.f32 %v929_v55, %v2323_v31  ;;  %v932_v22 = vmul.f32 %v929_v55, %v2325_v32  ;;  %v912_v40 = vadd.f32 %v909_v7, %v904_v2  ;;  %v938_v4 = vmul.f32 %v937_v48, %v2328_v35 }
 0x111   : > { %v913_v57 = vadd.f32 %v910_v61, %v905_v37  ;;  %v939_v17 = vmul.f32 %v937_v48, %v2330_v36  ;;  %v914_v41 = vadd.f32 %v911_v33, %v906_v30  ;;  %v933_v42 = vadd.f32 %v930_v46, %v925_v13 }
 0x112   : > { %v934_v56 = vadd.f32 %v931_v29, %v926_v15  ;;  %v935_v0 = vadd.f32 %v932_v22, %v927_v18  ;;  %v2798_v16 = vadd.f32 %v916_v8, %v912_v40  ;;  %v940_v55 = vmul.f32 %v937_v48, %v2334_v39 }
 0x113   : > { %v2800_v34 = vadd.f32 %v916_v8, %v913_v57  ;;  %v945_v47 = vstv %s2773_s10  ;;  %v941_v7 = vadd.f32 %v938_v4, %v933_v42  ;;  %v2808_v33 = vadd.f32 %v916_v8, %v914_v41  ;;  %s2857_s10 = sld [smem:[#allocation11 + $0x305]] }
 0x114   : > { %3321 = vst [vmem:[#allocation29_spill] sm:$0xff] %v2798_v16  ;;  %v942_v61 = vadd.f32 %v939_v17, %v934_v56  ;;  %v946_v2 = vmul.f32 %v945_v47, %v2350_v51  ;;  %v943_v15 = vadd.f32 %v940_v55, %v935_v0  ;;  %v947_v18 = vmul.f32 %v945_v47, %v2352_v52 }
 0x115   : > { %3322 = vst [vmem:[#allocation30_spill] sm:$0xff] %v2800_v34  ;;  %3323 = vst [vmem:[#allocation31_spill] sm:$0xff] %v2808_v33  ;;  %v948_v37 = vmul.f32 %v945_v47, %v2354_v53  ;;  %v953_v46 = vstv %s2783_s11  ;;  %v961_v4 = vstv %s2787_s25  ;;  %v969_v17 = vstv %s2792_s17  ;;  %s2859_s11 = sld [smem:[#allocation11 + $0x306]]  ;;  %s2872_s25 = sld [smem:[#allocation11 + $0x307]] }
 0x116   : > { %v949_v30 = vadd.f32 %v946_v2, %v941_v7  ;;  %v950_v29 = vadd.f32 %v947_v18, %v942_v61  ;;  %v954_v8 = vmul.f32 %v953_v46, %v2360_v59  ;;  %v955_v22 = vmul.f32 %v953_v46, %v2369_v63  ;;  %s2874_s17 = sld [smem:[#allocation11 + $0x308]] }
 0x117   : > { %v956_v40 = vmul.f32 %v953_v46, %v2371_v3  ;;  %v951_v57 = vadd.f32 %v948_v37, %v943_v15  ;;  %v977_v41 = vstv %s2794_s14  ;;  %v962_v56 = vmul.f32 %v961_v4, %v2376_v10  ;;  %s2886_s14 = sld [smem:[#allocation11 + $0x309]] }
 0x118   : > { %v957_v47 = vadd.f32 %v954_v8, %v949_v30  ;;  %v958_v42 = vadd.f32 %v955_v22, %v950_v29  ;;  %v963_v0 = vmul.f32 %v961_v4, %v2378_v11  ;;  %v964_v7 = vmul.f32 %v961_v4, %v2386_v14 }
 0x119   : > { %v959_v55 = vadd.f32 %v956_v40, %v951_v57  ;;  %v970_v61 = vmul.f32 %v969_v17, %v2392_v25  ;;  %v971_v2 = vmul.f32 %v969_v17, %v2394_v26  ;;  %v972_v37 = vmul.f32 %v969_v17, %v2396_v28 }
 0x11a   : > { %v965_v15 = vadd.f32 %v962_v56, %v957_v47  ;;  %v966_v18 = vadd.f32 %v963_v0, %v958_v42  ;;  %v978_v30 = vmul.f32 %v977_v41, %v2408_v43  ;;  %v979_v29 = vmul.f32 %v977_v41, %v2410_v44 }
 0x11b   : > { %v967_v46 = vadd.f32 %v964_v7, %v959_v55  ;;  %v980_v8 = vmul.f32 %v977_v41, %v2412_v45  ;;  %v985_v22 = vstv %s2806_s16  ;;  %v993_v56 = vstv %s2815_s20  ;;  %s2893_s16 = sld [smem:[#allocation12 + $0x6]]  ;;  %s2895_s20 = sld [smem:[#allocation11 + $0x380]] }
 0x11c   : > { %v973_v40 = vadd.f32 %v970_v61, %v965_v15  ;;  %v974_v57 = vadd.f32 %v971_v2, %v966_v18  ;;  %v986_v4 = vmul.f32 %v985_v22, %v2418_v54  ;;  %v987_v47 = vmul.f32 %v985_v22, %v2423_v58 }
 0x11d   : > { %v975_v42 = vadd.f32 %v972_v37, %v967_v46  ;;  %v988_v17 = vmul.f32 %v985_v22, %v2425_v60  ;;  %v1001_v0 = vstv %s2817_s6  ;;  %v994_v41 = vmul.f32 %v993_v56, %v2434_v5  ;;  %s2903_s6 = sld [smem:[#allocation11 + $0x381]] }
 0x11e   : > { %v981_v55 = vadd.f32 %v978_v30, %v973_v40  ;;  %v982_v7 = vadd.f32 %v979_v29, %v974_v57  ;;  %v995_v48 = vmul.f32 %v993_v56, %v2436_v6  ;;  %v996_v2 = vmul.f32 %v993_v56, %v2440_v9 }
 0x11f   : > { %v983_v61 = vadd.f32 %v980_v8, %v975_v42  ;;  %v1009_v15 = vstv %s2825_s13  ;;  %v1014_v18 = vstv %s2827_s15  ;;  %s2905_s13 = sld [smem:[#allocation11 + $0x382]]  ;;  %s2917_s15 = sld [smem:[#allocation11 + $0x383]] }
 0x120   : > { %v989_v37 = vadd.f32 %v986_v4, %v981_v55  ;;  %v990_v46 = vadd.f32 %v987_v47, %v982_v7  ;;  %v1010_v22 = vmul.f32 %v1009_v15, %v2309_v19  ;;  %v1011_v13 = vmul.f32 %v1009_v15, %v2311_v20 }
 0x121   : > { %v991_v30 = vadd.f32 %v988_v17, %v983_v61  ;;  %v1012_v29 = vmul.f32 %v1009_v15, %v2313_v21  ;;  %v1015_v8 = vmul.f32 %v1014_v18, %v2316_v27  ;;  %v1016_v40 = vmul.f32 %v1014_v18, %v2323_v31 }
 0x122   : > { %v997_v57 = vadd.f32 %v994_v41, %v989_v37  ;;  %v998_v42 = vadd.f32 %v995_v48, %v990_v46  ;;  %v1017_v4 = vmul.f32 %v1014_v18, %v2325_v32  ;;  %v1022_v47 = vstv %s2836_s30  ;;  %s2927_s30 = sld [smem:[#allocation11 + $0x384]] }
 0x123   : > { %v999_v56 = vadd.f32 %v996_v2, %v991_v30  ;;  %v1018_v55 = vadd.f32 %v1015_v8, %v1010_v22  ;;  %v1019_v7 = vadd.f32 %v1016_v40, %v1011_v13  ;;  %v1023_v62 = vmul.f32 %v1022_v47, %v2328_v35 }
 0x124   : > { %v2867_v34 = vadd.f32 %v1001_v0, %v997_v57  ;;  %v2869_v17 = vadd.f32 %v1001_v0, %v998_v42  ;;  %v1020_v61 = vadd.f32 %v1017_v4, %v1012_v29  ;;  %v1024_v15 = vmul.f32 %v1022_v47, %v2330_v36 }
 0x125   : > { %v1025_v13 = vmul.f32 %v1022_v47, %v2334_v39  ;;  %v1026_v41 = vadd.f32 %v1023_v62, %v1018_v55  ;;  %v1030_v2 = vstv %s2846_s24  ;;  %v2879_v18 = vadd.f32 %v1001_v0, %v999_v56  ;;  %s2931_s24 = sld [smem:[#allocation11 + $0x385]] }
 0x126   : > { %3324 = vst [vmem:[#allocation32_spill] sm:$0xff] %v2867_v34  ;;  %3325 = vst [vmem:[#allocation33_spill] sm:$0xff] %v2869_v17  ;;  %v1027_v46 = vadd.f32 %v1024_v15, %v1019_v7  ;;  %v1031_v22 = vmul.f32 %v1030_v2, %v2350_v51  ;;  %v1032_v8 = vmul.f32 %v1030_v2, %v2352_v52  ;;  %v1038_v42 = vstv %s2853_s21  ;;  %s2936_s21 = sld [smem:[#allocation11 + $0x386]] }
 0x127   : > { %v1028_v29 = vadd.f32 %v1025_v13, %v1020_v61  ;;  %v1033_v40 = vmul.f32 %v1030_v2, %v2354_v53  ;;  %v1046_v62 = vstv %s2857_s10  ;;  %v1054_v4 = vstv %s2859_s11  ;;  %s2938_s10 = sld [smem:[#allocation11 + $0x387]]  ;;  %s2950_s11 = sld [smem:[#allocation11 + $0x388]] }
 0x128   : > { %v1034_v57 = vadd.f32 %v1031_v22, %v1026_v41  ;;  %v1035_v0 = vadd.f32 %v1032_v8, %v1027_v46  ;;  %v1039_v56 = vmul.f32 %v1038_v42, %v2360_v59  ;;  %v1040_v55 = vmul.f32 %v1038_v42, %v2369_v63 }
 0x129   : > { %v1036_v47 = vadd.f32 %v1033_v40, %v1028_v29  ;;  %v1041_v7 = vmul.f32 %v1038_v42, %v2371_v3  ;;  %v1047_v61 = vmul.f32 %v1046_v62, %v2376_v10  ;;  %v1048_v15 = vmul.f32 %v1046_v62, %v2378_v11 }
 0x12a   : > { %v1049_v13 = vmul.f32 %v1046_v62, %v2386_v14  ;;  %v1042_v41 = vadd.f32 %v1039_v56, %v1034_v57  ;;  %v1043_v2 = vadd.f32 %v1040_v55, %v1035_v0  ;;  %v1055_v46 = vmul.f32 %v1054_v4, %v2392_v25 }
 0x12b   : > { %v1056_v22 = vmul.f32 %v1054_v4, %v2394_v26  ;;  %v1044_v29 = vadd.f32 %v1041_v7, %v1036_v47  ;;  %v1057_v8 = vmul.f32 %v1054_v4, %v2396_v28  ;;  %v1062_v40 = vstv %s2872_s25  ;;  %s2959_s25 = sld [smem:[#allocation11 + $0x389]] }
 0x12c   : > { %v1070_v42 = vstv %s2874_s17  ;;  %v1050_v30 = vadd.f32 %v1047_v61, %v1042_v41  ;;  %v1051_v37 = vadd.f32 %v1048_v15, %v1043_v2  ;;  %v1063_v62 = vmul.f32 %v1062_v40, %v2408_v43  ;;  %s2961_s17 = sld [smem:[#allocation12 + $0x7]] }
 0x12d   : > { %v1064_v57 = vmul.f32 %v1062_v40, %v2410_v44  ;;  %v1052_v0 = vadd.f32 %v1049_v13, %v1044_v29  ;;  %v1065_v56 = vmul.f32 %v1062_v40, %v2412_v45  ;;  %v1071_v55 = vmul.f32 %v1070_v42, %v2418_v54 }
 0x12e   : > { %v1072_v48 = vmul.f32 %v1070_v42, %v2423_v58  ;;  %v1058_v47 = vadd.f32 %v1055_v46, %v1050_v30  ;;  %v1059_v7 = vadd.f32 %v1056_v22, %v1051_v37  ;;  %v1073_v4 = vmul.f32 %v1070_v42, %v2425_v60 }
 0x12f   : > { %v1078_v17 = vstv %s2886_s14  ;;  %v1060_v61 = vadd.f32 %v1057_v8, %v1052_v0  ;;  %v1086_v40 = vstv %s2893_s16  ;;  %v1094_v34 = vstv %s2895_s20  ;;  %s2969_s14 = sld [smem:[#allocation11 + $0x400]]  ;;  %s2971_s16 = sld [smem:[#allocation11 + $0x401]] }
 0x130   : > { %v1079_v15 = vmul.f32 %v1078_v17, %v2434_v5  ;;  %v1080_v13 = vmul.f32 %v1078_v17, %v2436_v6  ;;  %v1081_v41 = vmul.f32 %v1078_v17, %v2440_v9  ;;  %v1066_v2 = vadd.f32 %v1063_v62, %v1058_v47  ;;  %s2980_s20 = sld [smem:[#allocation11 + $0x402]] }
 0x131   : > { %v1067_v29 = vadd.f32 %v1064_v57, %v1059_v7  ;;  %v1068_v30 = vadd.f32 %v1065_v56, %v1060_v61  ;;  %v1095_v37 = vmul.f32 %v1094_v34, %v2309_v19  ;;  %v1096_v46 = vmul.f32 %v1094_v34, %v2311_v20 }
 0x132   : > { %v1097_v22 = vmul.f32 %v1094_v34, %v2313_v21  ;;  %v1074_v8 = vadd.f32 %v1071_v55, %v1066_v2  ;;  %v1099_v0 = vstv %s2903_s6  ;;  %v1107_v33 = vstv %s2905_s13  ;;  %s2990_s6 = sld [smem:[#allocation11 + $0x403]]  ;;  %s2997_s13 = sld [smem:[#allocation11 + $0x404]] }
 0x133   : > { %v1075_v42 = vadd.f32 %v1072_v48, %v1067_v29  ;;  %v1076_v17 = vadd.f32 %v1073_v4, %v1068_v30  ;;  %v1100_v62 = vmul.f32 %v1099_v0, %v2316_v27  ;;  %v1101_v57 = vmul.f32 %v1099_v0, %v2323_v31 }
 0x134   : > { %v1102_v56 = vmul.f32 %v1099_v0, %v2325_v32  ;;  %v1082_v34 = vadd.f32 %v1079_v15, %v1074_v8  ;;  %v1108_v48 = vmul.f32 %v1107_v33, %v2328_v35  ;;  %v1109_v55 = vmul.f32 %v1107_v33, %v2330_v36 }
 0x135   : > { %v1083_v47 = vadd.f32 %v1080_v13, %v1075_v42  ;;  %v1084_v7 = vadd.f32 %v1081_v41, %v1076_v17  ;;  %v1103_v61 = vadd.f32 %v1100_v62, %v1095_v37  ;;  %v1104_v4 = vadd.f32 %v1101_v57, %v1096_v46 }
 0x136   : > { %v1105_v2 = vadd.f32 %v1102_v56, %v1097_v22  ;;  %v2942_v29 = vadd.f32 %v1086_v40, %v1082_v34  ;;  %v1110_v0 = vmul.f32 %v1107_v33, %v2334_v39  ;;  %v1115_v16 = vstv %s2917_s15  ;;  %s3001_s15 = sld [smem:[#allocation11 + $0x405]] }
 0x137   : > { %v2944_v30 = vadd.f32 %v1086_v40, %v1083_v47  ;;  %v1111_v15 = vadd.f32 %v1108_v48, %v1103_v61  ;;  %v1112_v13 = vadd.f32 %v1109_v55, %v1104_v4  ;;  %v1116_v8 = vmul.f32 %v1115_v16, %v2350_v51 }
 0x138   : > { %v2952_v41 = vadd.f32 %v1086_v40, %v1084_v7  ;;  %v1113_v46 = vadd.f32 %v1110_v0, %v1105_v2  ;;  %v1117_v22 = vmul.f32 %v1115_v16, %v2352_v52  ;;  %v1118_v42 = vmul.f32 %v1115_v16, %v2354_v53 }
 0x139   : > { %3326 = vst [vmem:[#allocation34_spill] sm:$0xff] %v2944_v30  ;;  %v1119_v17 = vadd.f32 %v1116_v8, %v1111_v15  ;;  %v1123_v62 = vstv %s2927_s30  ;;  %v1131_v48 = vstv %s2931_s24  ;;  %v1139_v55 = vstv %s2936_s21  ;;  %s3003_s30 = sld [smem:[#allocation11 + $0x406]]  ;;  %s3016_s24 = sld [smem:[#allocation11 + $0x407]] }
 0x13a   : > { %3327 = vst [vmem:[#allocation35_spill] sm:$0xff] %v2952_v41  ;;  %v1120_v57 = vadd.f32 %v1117_v22, %v1112_v13  ;;  %v1124_v40 = vmul.f32 %v1123_v62, %v2360_v59  ;;  %v1125_v56 = vmul.f32 %v1123_v62, %v2369_v63  ;;  %v1126_v34 = vmul.f32 %v1123_v62, %v2371_v3  ;;  %s3018_s21 = sld [smem:[#allocation11 + $0x408]] }
 0x13b   : > { %v1121_v47 = vadd.f32 %v1118_v42, %v1113_v46  ;;  %v1147_v7 = vstv %s2938_s10  ;;  %v1132_v4 = vmul.f32 %v1131_v48, %v2376_v10  ;;  %v1133_v2 = vmul.f32 %v1131_v48, %v2378_v11  ;;  %s3030_s10 = sld [smem:[#allocation11 + $0x409]] }
 0x13c   : > { %v1127_v16 = vadd.f32 %v1124_v40, %v1119_v17  ;;  %v1128_v61 = vadd.f32 %v1125_v56, %v1120_v57  ;;  %v1134_v15 = vmul.f32 %v1131_v48, %v2386_v14  ;;  %v1140_v13 = vmul.f32 %v1139_v55, %v2392_v25 }
 0x13d   : > { %v1129_v0 = vadd.f32 %v1126_v34, %v1121_v47  ;;  %v1141_v8 = vmul.f32 %v1139_v55, %v2394_v26  ;;  %v1142_v42 = vmul.f32 %v1139_v55, %v2396_v28  ;;  %v1148_v17 = vmul.f32 %v1147_v7, %v2408_v43 }
 0x13e   : > { %v1135_v46 = vadd.f32 %v1132_v4, %v1127_v16  ;;  %v1136_v22 = vadd.f32 %v1133_v2, %v1128_v61  ;;  %v1149_v57 = vmul.f32 %v1147_v7, %v2410_v44  ;;  %v1150_v40 = vmul.f32 %v1147_v7, %v2412_v45 }
 0x13f   : > { %v1137_v62 = vadd.f32 %v1134_v15, %v1129_v0  ;;  %v1155_v56 = vstv %s2950_s11  ;;  %v1163_v4 = vstv %s2959_s25  ;;  %v1171_v2 = vstv %s2961_s17  ;;  %s3037_s11 = sld [smem:[#allocation12 + $0x8]]  ;;  %s3047_s17 = sld [smem:[#allocation11 + $0x481]] }
 0x140   : > { %v1143_v34 = vadd.f32 %v1140_v13, %v1135_v46  ;;  %v1144_v47 = vadd.f32 %v1141_v8, %v1136_v22  ;;  %v1156_v48 = vmul.f32 %v1155_v56, %v2418_v54  ;;  %v1157_v16 = vmul.f32 %v1155_v56, %v2423_v58  ;;  %s3039_s25 = sld [smem:[#allocation11 + $0x480]] }
 0x141   : > { %v1145_v61 = vadd.f32 %v1142_v42, %v1137_v62  ;;  %v1158_v55 = vmul.f32 %v1155_v56, %v2425_v60  ;;  %v1164_v7 = vmul.f32 %v1163_v4, %v2434_v5  ;;  %v1165_v33 = vmul.f32 %v1163_v4, %v2436_v6 }
 0x142   : > { %v1151_v0 = vadd.f32 %v1148_v17, %v1143_v34  ;;  %v1152_v15 = vadd.f32 %v1149_v57, %v1144_v47  ;;  %v1166_v8 = vmul.f32 %v1163_v4, %v2440_v9  ;;  %v1179_v46 = vstv %s2969_s14  ;;  %s3049_s14 = sld [smem:[#allocation11 + $0x482]] }
 0x143   : > { %v1153_v13 = vadd.f32 %v1150_v40, %v1145_v61  ;;  %v1184_v22 = vstv %s2971_s16  ;;  %v1180_v56 = vmul.f32 %v1179_v46, %v2309_v19  ;;  %v1181_v37 = vmul.f32 %v1179_v46, %v2311_v20  ;;  %s3061_s16 = sld [smem:[#allocation11 + $0x483]] }
 0x144   : > { %v1159_v42 = vadd.f32 %v1156_v48, %v1151_v0  ;;  %v1160_v62 = vadd.f32 %v1157_v16, %v1152_v15  ;;  %v1182_v57 = vmul.f32 %v1179_v46, %v2313_v21  ;;  %v1185_v40 = vmul.f32 %v1184_v22, %v2316_v27 }
 0x145   : > { %v1161_v17 = vadd.f32 %v1158_v55, %v1153_v13  ;;  %v1186_v34 = vmul.f32 %v1184_v22, %v2323_v31  ;;  %v1187_v48 = vmul.f32 %v1184_v22, %v2325_v32  ;;  %v1192_v16 = vstv %s2980_s20  ;;  %s3071_s20 = sld [smem:[#allocation11 + $0x484]] }
 0x146   : > { %v1167_v47 = vadd.f32 %v1164_v7, %v1159_v42  ;;  %v1168_v61 = vadd.f32 %v1165_v33, %v1160_v62  ;;  %v1188_v0 = vadd.f32 %v1185_v40, %v1180_v56  ;;  %v1193_v12 = vmul.f32 %v1192_v16, %v2328_v35 }
 0x147   : > { %v1169_v4 = vadd.f32 %v1166_v8, %v1161_v17  ;;  %v1189_v15 = vadd.f32 %v1186_v34, %v1181_v37  ;;  %v1190_v13 = vadd.f32 %v1187_v48, %v1182_v57  ;;  %v1194_v46 = vmul.f32 %v1192_v16, %v2330_v36 }
 0x148   : > { %v3011_v30 = vadd.f32 %v1171_v2, %v1167_v47  ;;  %v3013_v55 = vadd.f32 %v1171_v2, %v1168_v61  ;;  %v1195_v37 = vmul.f32 %v1192_v16, %v2334_v39  ;;  %v1196_v7 = vadd.f32 %v1193_v12, %v1188_v0 }
 0x149   : > { %v1200_v8 = vstv %s2990_s6  ;;  %v3023_v22 = vadd.f32 %v1171_v2, %v1169_v4  ;;  %v1197_v62 = vadd.f32 %v1194_v46, %v1189_v15  ;;  %v1208_v61 = vstv %s2997_s13  ;;  %s3075_s6 = sld [smem:[#allocation11 + $0x485]]  ;;  %s3080_s13 = sld [smem:[#allocation11 + $0x486]] }
 0x14a   : > { %3328 = vst [vmem:[#allocation36_spill] sm:$0xff] %v3011_v30  ;;  %3329 = vst [vmem:[#allocation37_spill] sm:$0xff] %v3013_v55  ;;  %v1201_v56 = vmul.f32 %v1200_v8, %v2350_v51  ;;  %v1198_v57 = vadd.f32 %v1195_v37, %v1190_v13  ;;  %v1202_v40 = vmul.f32 %v1200_v8, %v2352_v52  ;;  %v1216_v12 = vstv %s3001_s15  ;;  %s3082_s15 = sld [smem:[#allocation11 + $0x487]] }
 0x14b   : > { %v1203_v34 = vmul.f32 %v1200_v8, %v2354_v53  ;;  %v1224_v48 = vstv %s3003_s30  ;;  %v1209_v4 = vmul.f32 %v1208_v61, %v2360_v59  ;;  %v1210_v0 = vmul.f32 %v1208_v61, %v2369_v63  ;;  %s3094_s30 = sld [smem:[#allocation11 + $0x488]] }
 0x14c   : > { %v1204_v47 = vadd.f32 %v1201_v56, %v1196_v7  ;;  %v1205_v2 = vadd.f32 %v1202_v40, %v1197_v62  ;;  %v1211_v15 = vmul.f32 %v1208_v61, %v2371_v3  ;;  %v1217_v13 = vmul.f32 %v1216_v12, %v2376_v10 }
 0x14d   : > { %v1206_v16 = vadd.f32 %v1203_v34, %v1198_v57  ;;  %v1218_v46 = vmul.f32 %v1216_v12, %v2378_v11  ;;  %v1219_v37 = vmul.f32 %v1216_v12, %v2386_v14  ;;  %v1225_v62 = vmul.f32 %v1224_v48, %v2392_v25 }
 0x14e   : > { %v1212_v7 = vadd.f32 %v1209_v4, %v1204_v47  ;;  %v1213_v8 = vadd.f32 %v1210_v0, %v1205_v2  ;;  %v1226_v56 = vmul.f32 %v1224_v48, %v2394_v26  ;;  %v1227_v40 = vmul.f32 %v1224_v48, %v2396_v28 }
 0x14f   : > { %v1214_v57 = vadd.f32 %v1211_v15, %v1206_v16  ;;  %v1232_v34 = vstv %s3016_s24  ;;  %v1240_v61 = vstv %s3018_s21  ;;  %v1248_v55 = vstv %s3030_s10  ;;  %s3103_s24 = sld [smem:[#allocation11 + $0x489]]  ;;  %s3113_s10 = sld [smem:[#allocation13]] }
 0x150   : > { %v1220_v17 = vadd.f32 %v1217_v13, %v1212_v7  ;;  %v1221_v42 = vadd.f32 %v1218_v46, %v1213_v8  ;;  %v1233_v12 = vmul.f32 %v1232_v34, %v2408_v43  ;;  %v1234_v47 = vmul.f32 %v1232_v34, %v2410_v44  ;;  %s3105_s21 = sld [smem:[#allocation12 + $0x9]] }
 0x151   : > { %v1222_v2 = vadd.f32 %v1219_v37, %v1214_v57  ;;  %v1235_v4 = vmul.f32 %v1232_v34, %v2412_v45  ;;  %v1241_v0 = vmul.f32 %v1240_v61, %v2418_v54  ;;  %v1242_v33 = vmul.f32 %v1240_v61, %v2423_v58 }
 0x152   : > { %v1228_v16 = vadd.f32 %v1225_v62, %v1220_v17  ;;  %v1229_v15 = vadd.f32 %v1226_v56, %v1221_v42  ;;  %v1243_v48 = vmul.f32 %v1240_v61, %v2425_v60  ;;  %v1249_v46 = vmul.f32 %v1248_v55, %v2434_v5 }
 0x153   : > { %v1230_v13 = vadd.f32 %v1227_v40, %v1222_v2  ;;  %v1250_v37 = vmul.f32 %v1248_v55, %v2436_v6  ;;  %v1251_v7 = vmul.f32 %v1248_v55, %v2440_v9  ;;  %v1256_v34 = vstv %s3037_s11  ;;  %s3115_s11 = sld [smem:[#allocation13 + $0x1]] }
 0x154   : > { %v1236_v8 = vadd.f32 %v1233_v12, %v1228_v16  ;;  %v1237_v57 = vadd.f32 %v1234_v47, %v1229_v15  ;;  %v1264_v30 = vstv %s3039_s25  ;;  %v1269_v2 = vstv %s3047_s17  ;;  %s3124_s25 = sld [smem:[#allocation13 + $0x2]]  ;;  %s3134_s17 = sld [smem:[#allocation13 + $0x3]] }
 0x155   : > { %v1238_v17 = vadd.f32 %v1235_v4, %v1230_v13  ;;  %v1265_v42 = vmul.f32 %v1264_v30, %v2309_v19  ;;  %v1266_v62 = vmul.f32 %v1264_v30, %v2311_v20  ;;  %v1267_v56 = vmul.f32 %v1264_v30, %v2313_v21 }
 0x156   : > { %v1244_v40 = vadd.f32 %v1241_v0, %v1236_v8  ;;  %v1245_v61 = vadd.f32 %v1242_v33, %v1237_v57  ;;  %v1277_v41 = vstv %s3049_s14  ;;  %v1270_v12 = vmul.f32 %v1269_v2, %v2316_v27  ;;  %s3141_s14 = sld [smem:[#allocation13 + $0x4]] }
 0x157   : > { %v1246_v55 = vadd.f32 %v1243_v48, %v1238_v17  ;;  %v1271_v47 = vmul.f32 %v1269_v2, %v2323_v31  ;;  %v1272_v19 = vmul.f32 %v1269_v2, %v2325_v32  ;;  %v1278_v30 = vmul.f32 %v1277_v41, %v2328_v35 }
 0x158   : > { %v1252_v20 = vadd.f32 %v1249_v46, %v1244_v40  ;;  %v1253_v21 = vadd.f32 %v1250_v37, %v1245_v61  ;;  %v1279_v33 = vmul.f32 %v1277_v41, %v2330_v36  ;;  %v1273_v0 = vadd.f32 %v1270_v12, %v1265_v42 }
 0x159   : > { %v1254_v4 = vadd.f32 %v1251_v7, %v1246_v55  ;;  %v1274_v16 = vadd.f32 %v1271_v47, %v1266_v62  ;;  %v1275_v15 = vadd.f32 %v1272_v19, %v1267_v56  ;;  %v1280_v32 = vmul.f32 %v1277_v41, %v2334_v39 }
 0x15a   : > { %v3086_v27 = vadd.f32 %v1256_v34, %v1252_v20  ;;  %v3088_v31 = vadd.f32 %v1256_v34, %v1253_v21  ;;  %v1285_v48 = vstv %s3061_s16  ;;  %v1177_v13 = vmax.f32 %v3023_v22, 0.0  ;;  %s3147_s16 = sld [smem:[#allocation13 + $0x5]] }
 0x15b   : > { %v1281_v46 = vadd.f32 %v1278_v30, %v1273_v0  ;;  %v1282_v37 = vadd.f32 %v1279_v33, %v1274_v16  ;;  %v1286_v35 = vmul.f32 %v1285_v48, %v2350_v51  ;;  %v3096_v36 = vadd.f32 %v1256_v34, %v1254_v4 }
 0x15c   : > { %v1260_v7 = vmax.f32 %v3086_v27, 0.0  ;;  %v1283_v8 = vadd.f32 %v1280_v32, %v1275_v15  ;;  %v1287_v57 = vmul.f32 %v1285_v48, %v2352_v52  ;;  %v1261_v39 = vmax.f32 %v3088_v31, 0.0 }
 0x15d   : > { %v1288_v41 = vmul.f32 %v1285_v48, %v2354_v53  ;;  %v1289_v17 = vadd.f32 %v1286_v35, %v1281_v46  ;;  %v1293_v42 = vstv %s3071_s20  ;;  %v1301_v61 = vstv %s3075_s6  ;;  %s3149_s20 = sld [smem:[#allocation13 + $0x6]]  ;;  %s3164_s6 = sld [smem:[#allocation13 + $0x7]] }
 0x15e   : > { %v1290_v51 = vadd.f32 %v1287_v57, %v1282_v37  ;;  %v1294_v34 = vmul.f32 %v1293_v42, %v2360_v59  ;;  %v1295_v62 = vmul.f32 %v1293_v42, %v2369_v63  ;;  %v1296_v56 = vmul.f32 %v1293_v42, %v2371_v3 }
 0x15f   : > { %v1291_v40 = vadd.f32 %v1288_v41, %v1283_v8  ;;  %v1309_v52 = vstv %s3080_s13  ;;  %v1317_v2 = vstv %s3082_s15  ;;  %v1302_v12 = vmul.f32 %v1301_v61, %v2376_v10  ;;  %s3166_s13 = sld [smem:[#allocation13 + $0x8]]  ;;  %s3178_s15 = sld [smem:[#allocation13 + $0x9]] }
 0x160   : > { %v1297_v53 = vadd.f32 %v1294_v34, %v1289_v17  ;;  %v1298_v55 = vadd.f32 %v1295_v62, %v1290_v51  ;;  %v1303_v47 = vmul.f32 %v1301_v61, %v2378_v11  ;;  %v1304_v63 = vmul.f32 %v1301_v61, %v2386_v14 }
 0x161   : > { %v1299_v59 = vadd.f32 %v1296_v56, %v1291_v40  ;;  %v1310_v3 = vmul.f32 %v1309_v52, %v2392_v25  ;;  %v1311_v19 = vmul.f32 %v1309_v52, %v2394_v26  ;;  %v1312_v30 = vmul.f32 %v1309_v52, %v2396_v28 }
 0x162   : > { %v1305_v20 = vadd.f32 %v1302_v12, %v1297_v53  ;;  %v1306_v21 = vadd.f32 %v1303_v47, %v1298_v55  ;;  %v1318_v33 = vmul.f32 %v1317_v2, %v2408_v43  ;;  %v1319_v11 = vmul.f32 %v1317_v2, %v2410_v44  ;;  %v3336_v12 = vld [vmem:[#allocation23_spill] sm:$0xff] }
 0x163   : > { %v1307_v10 = vadd.f32 %v1304_v63, %v1299_v59  ;;  %v1320_v4 = vmul.f32 %v1317_v2, %v2412_v45  ;;  %v1325_v14 = vstv %s3094_s30  ;;  %v1333_v43 = vstv %s3103_s24  ;;  %s1425_s30 = sld [smem:[#allocation2]]  ;;  %s1727_s24 = smul.u32 384, %s2100_s9 }
 0x164   : > { %v1313_v25 = vadd.f32 %v1310_v3, %v1305_v20  ;;  %v1314_v26 = vadd.f32 %v1311_v19, %v1306_v21  ;;  %v1326_v0 = vmul.f32 %v1325_v14, %v2418_v54  ;;  %v1327_v16 = vmul.f32 %v1325_v14, %v2423_v58  ;;  %v3338_v3 = vld [vmem:[#allocation24_spill] sm:$0xff]  ;;  %v3340_v20 = vld [vmem:[#allocation25_spill] sm:$0xff]  ;;  %s1434_s9 = scalar_lea.sflag [#allocation5], %s2253_s22 }
 0x165   : > { %v1315_v15 = vadd.f32 %v1312_v30, %v1307_v10  ;;  %v1328_v28 = vmul.f32 %v1325_v14, %v2425_v60  ;;  %v1341_v32 = vstv %s3105_s21  ;;  %v1334_v45 = vmul.f32 %v1333_v43, %v2434_v5  ;;  %s362_s21 = scalar_lea.vmem [#allocation15], %s1729_s23 }
 0x166   : > { %v1321_v48 = vadd.f32 %v1318_v33, %v1313_v25  ;;  %v1322_v44 = vadd.f32 %v1319_v11, %v1314_v26  ;;  %v1335_v46 = vmul.f32 %v1333_v43, %v2436_v6  ;;  %v1336_v35 = vmul.f32 %v1333_v43, %v2440_v9  ;;  %v3342_v25 = vld [vmem:[#allocation26_spill] sm:$0xff] }
 0x167   : > { %v1323_v37 = vadd.f32 %v1320_v4, %v1315_v15  ;;  %v1349_v8 = vstv %s3113_s10  ;;  %v1354_v54 = vstv %s3115_s11  ;;  %v3330_v57 = vmax.f32 %v2511_v23, 0.0  ;;  %s1447_s10 = sshll.u32 %s362_s21, 4  ;;  %s3222_s10 = int_to_ptr.vmem [resolvable:$true] %s1447_s10 }
 0x168   : > { %v1329_v58 = vadd.f32 %v1326_v0, %v1321_v48  ;;  %v1330_v60 = vadd.f32 %v1327_v16, %v1322_v44  ;;  %v3331_v17 = vmax.f32 %v2513_v24, 0.0  ;;  %v3332_v6 = vmax.f32 %v2520_v38, 0.0  ;;  %v3346_v44 = vld [vmem:[#allocation28_spill] sm:$0xff]  ;;  %s1934_s23 = scalar_lea.vmem %s3222_s10, 384 }
 0x169   : > { %v1350_v41 = vmul.f32 %v1349_v8, %v3330_v57  ;;  %v1331_v5 = vadd.f32 %v1328_v28, %v1323_v37  ;;  %v3333_v51 = vmax.f32 %v2579_v49, 0.0  ;;  %v3334_v62 = vmax.f32 %v2581_v50, 0.0  ;;  %v3344_v28 = vld [vmem:[#allocation27_spill] sm:$0xff]  ;;  %p1935_p5 = scmp.ne.s32.totalorder %s3222_s10, %s1934_s23 }
 0x16a   : > { %v1351_v42 = vmul.f32 %v1349_v8, %v3331_v17  ;;  %v1352_v9 = vmul.f32 %v1349_v8, %v3332_v6  ;;  %v1337_v40 = vadd.f32 %v1334_v45, %v1329_v58  ;;  %v1338_v23 = vadd.f32 %v1335_v46, %v1330_v60  ;;  %v3348_v58 = vld [vmem:[#allocation29_spill] sm:$0xff] }
 0x16b   : > { %v1355_v34 = vmul.f32 %v1354_v54, %v3333_v51  ;;  %v1356_v56 = vmul.f32 %v1354_v54, %v3334_v62  ;;  %v3335_v61 = vmax.f32 %v2591_v1, 0.0  ;;  %v1362_v52 = vstv %s3124_s25  ;;  %v3354_v51 = vld [vmem:[#allocation32_spill] sm:$0xff]  ;;  %p1936_p9 = pnand %p1935_p5, %p3368_p7 }
 0x16c   : > { %v1339_v2 = vadd.f32 %v1336_v35, %v1331_v5  ;;  %v3337_v47 = vmax.f32 %v3336_v12, 0.0  ;;  %v1342_v59 = vadd.f32 %v1341_v32, %v1337_v40  ;;  %v1343_v63 = vadd.f32 %v1341_v32, %v1338_v23  ;;  %v3352_v5 = vld [vmem:[#allocation31_spill] sm:$0xff]  ;;  %v3360_v12 = vld [vmem:[#allocation34_spill] sm:$0xff] }
 0x16d   : > { %v1357_v24 = vmul.f32 %v1354_v54, %v3335_v61  ;;  %v1358_v53 = vadd.f32 %v1355_v34, %v1350_v41  ;;  %v1359_v55 = vadd.f32 %v1356_v56, %v1351_v42  ;;  %v3339_v19 = vmax.f32 %v3338_v3, 0.0  ;;  %v3350_v41 = vld [vmem:[#allocation30_spill] sm:$0xff]  ;;  %v3356_v56 = vld [vmem:[#allocation33_spill] sm:$0xff]  ;;  %p1937_p8 = pneg %p1936_p9 }
 0x16e   : > { %v1363_v38 = vmul.f32 %v1362_v52, %v3337_v47  ;;  %v1262_v1 = vmax.f32 %v3096_v36, 0.0  ;;  %v3341_v21 = vmax.f32 %v3340_v20, 0.0  ;;  %v1370_v10 = vstv %s3134_s17  ;;  %s3220_s17 = scalar_lea.hbm %s3273_s7, %s1727_s24 }
 0x16f   : > { %v1360_v49 = vadd.f32 %v1357_v24, %v1352_v9  ;;  %v1364_v50 = vmul.f32 %v1362_v52, %v3339_v19  ;;  %v1344_v11 = vadd.f32 %v1341_v32, %v1339_v2  ;;  %v1345_v4 = vmax.f32 %v1342_v59, 0.0 }
 0x170   : > { %v1365_v30 = vmul.f32 %v1362_v52, %v3341_v21  ;;  %v1366_v33 = vadd.f32 %v1363_v38, %v1358_v53  ;;  %v3343_v26 = vmax.f32 %v3342_v25, 0.0  ;;  %v1346_v16 = vmax.f32 %v1343_v63, 0.0  ;;  %v3362_v63 = vld [vmem:[#allocation35_spill] sm:$0xff] }
 0x171   : > { %v1367_v14 = vadd.f32 %v1364_v50, %v1359_v55  ;;  %v3345_v43 = vmax.f32 %v3344_v28, 0.0  ;;  %v3347_v45 = vmax.f32 %v3346_v44, 0.0  ;;  %v1378_v37 = vstv %s3141_s14  ;;  %s2030_s14 = smov [#allocation15]  }
 0x172   : > { %v1371_v0 = vmul.f32 %v1370_v10, %v3343_v26  ;;  %v1368_v15 = vadd.f32 %v1365_v30, %v1360_v49  ;;  %v1386_v35 = vstv %s3147_s16  ;;  %v1394_v32 = vstv %s3149_s20  ;;  %s1938_s16 = sshll.u32 %s2030_s14, 4  ;;  %s1939_s16 = int_to_ptr.vmem [resolvable:$false] %s1938_s16 }
 0x173   : > { %v1372_v48 = vmul.f32 %v1370_v10, %v3345_v43  ;;  %v1373_v36 = vmul.f32 %v1370_v10, %v3347_v45  ;;  %v3349_v60 = vmax.f32 %v3348_v58, 0.0  ;;  %v3351_v17 = vmax.f32 %v3350_v41, 0.0  ;;  %v3366_v10 = vld [vmem:[#allocation37_spill] sm:$0xff]  ;;  %s1940_s20 = scalar_lea.vmem %s1939_s16, 768  ;;  %p1941_p6 = scmp.lt.s32.totalorder %s3222_s10, %s1939_s16 }
 0x174   : > { %v1374_v46 = vadd.f32 %v1371_v0, %v1366_v33  ;;  %v3353_v6 = vmax.f32 %v3352_v5, 0.0  ;;  %v3355_v34 = vmax.f32 %v3354_v51, 0.0  ;;  %v3357_v40 = vmax.f32 %v3356_v56, 0.0  ;;  %p1942_p3 = scmp.lt.s32.totalorder %s1940_s20, %s1934_s23 }
 0x175   : > { %v1375_v8 = vadd.f32 %v1372_v48, %v1367_v14  ;;  %v1376_v54 = vadd.f32 %v1373_v36, %v1368_v15  ;;  %v1379_v57 = vmul.f32 %v1378_v37, %v3349_v60  ;;  %v1380_v42 = vmul.f32 %v1378_v37, %v3351_v17 }
 0x176   : > { %v1381_v9 = vmul.f32 %v1378_v37, %v3353_v6  ;;  %v1387_v62 = vmul.f32 %v1386_v35, %v3355_v34  ;;  %v1388_v23 = vmul.f32 %v1386_v35, %v3357_v40  ;;  %v3358_v61 = vmax.f32 %v2879_v18, 0.0  ;;  %v3364_v18 = vld [vmem:[#allocation36_spill] sm:$0xff]  ;;  %p1943_p4 = por %p1942_p3, %p1941_p6 }
 0x177   : > { %v1382_v52 = vadd.f32 %v1379_v57, %v1374_v46  ;;  %v1383_v2 = vadd.f32 %v1380_v42, %v1375_v8  ;;  %v3359_v53 = vmax.f32 %v2942_v29, 0.0  ;;  %v3361_v47 = vmax.f32 %v3360_v12, 0.0 }
 0x178   : > { %v1389_v24 = vmul.f32 %v1386_v35, %v3358_v61  ;;  %v1384_v59 = vadd.f32 %v1381_v9, %v1376_v54  ;;  %v3363_v49 = vmax.f32 %v3362_v63, 0.0  ;;  %v1402_v19 = vstv %s3164_s6  ;;  %p1944_p2 = pnand %p1943_p4, %p1937_p8 }
 0x179   : > { %v1395_v55 = vmul.f32 %v1394_v32, %v3359_v53  ;;  %v1396_v38 = vmul.f32 %v1394_v32, %v3361_v47  ;;  %v1410_v50 = vstv %s3166_s13  ;;  %v1390_v20 = vadd.f32 %v1387_v62, %v1382_v52 }
 0x17a   : > { %v1397_v3 = vmul.f32 %v1394_v32, %v3363_v49  ;;  %v1391_v21 = vadd.f32 %v1388_v23, %v1383_v2  ;;  %v3365_v30 = vmax.f32 %v3364_v18, 0.0  ;;  %v3367_v14 = vmax.f32 %v3366_v10, 0.0 }
 0x17b   : > { %v1347_v25 = vmax.f32 %v1344_v11, 0.0  ;;  %v1392_v26 = vadd.f32 %v1389_v24, %v1384_v59  ;;  %v1405_v0 = vmul.f32 %v1402_v19, %v1177_v13  ;;  %v1411_v15 = vmul.f32 %v1410_v50, %v1260_v7 }
 0x17c   : > { %v1403_v33 = vmul.f32 %v1402_v19, %v3365_v30  ;;  %v1404_v29 = vmul.f32 %v1402_v19, %v3367_v14  ;;  %v1398_v28 = vadd.f32 %v1395_v55, %v1390_v20  ;;  %v1399_v43 = vadd.f32 %v1396_v38, %v1391_v21 }
 0x17d   : > { %v1412_v48 = vmul.f32 %v1410_v50, %v1261_v39  ;;  %v1418_v44 = vstv %s3178_s15  ;;  %v1400_v45 = vadd.f32 %v1397_v3, %v1392_v26  ;;  %v1413_v36 = vmul.f32 %v1410_v50, %v1262_v1 }
 0x17e   : > { %v1406_v46 = vadd.f32 %v1403_v33, %v1398_v28  ;;  %v1407_v37 = vadd.f32 %v1404_v29, %v1399_v43  ;;  %v1419_v11 = vmul.f32 %v1418_v44, %v1345_v4  ;;  %v1420_v35 = vmul.f32 %v1418_v44, %v1346_v16 }
 0x17f   : > { %v1408_v32 = vadd.f32 %v1405_v0, %v1400_v45  ;;  %v1421_v22 = vmul.f32 %v1418_v44, %v1347_v25  ;;  %v1426_v7 = vstv %s1425_s30 }
 0x180   : > { %v1414_v13 = vadd.f32 %v1411_v15, %v1406_v46  ;;  %v1415_v8 = vadd.f32 %v1412_v48, %v1407_v37 }
 0x181   : > { %v1416_v27 = vadd.f32 %v1413_v36, %v1408_v32 }
 0x182   : > { %v1422_v31 = vadd.f32 %v1419_v11, %v1414_v13  ;;  %v1423_v39 = vadd.f32 %v1420_v35, %v1415_v8 }
 0x183   : > { %v1424_v54 = vadd.f32 %v1421_v22, %v1416_v27 }
 0x184   : > { %v1427_v1 = vadd.f32 %v1426_v7, %v1422_v31  ;;  %v1428_v58 = vadd.f32 %v1426_v7, %v1423_v39 }
 0x185   : > { %v1429_v4 = vadd.f32 %v1426_v7, %v1424_v54 }
 0x186   : > { %1430 = vst [vmem:[%s362_s21] sm:$0xff] %v1427_v1  ;;  %1431 = vst [vmem:[%s362_s21 + $0x8] sm:$0xff] %v1428_v58 }
 0x187   : > { %1432 = vst [vmem:[%s362_s21 + $0x10] sm:$0xff] %v1429_v4 }
 0x188   : > { %1947 = shalt.err (!%p1944_p2)
}
 0x189   : > { %s1948_s6 = scalar_lea.hbm %s3220_s17, 384  ;;  %s1952_s30 = scalar_lea.hbm %s3273_s7, 768 }
 0x18a   : > { %p1949_p10 = scmp.ne.s32.totalorder %s3220_s17, %s1948_s6  ;;  %p1953_p1 = scmp.lt.u32.totalorder %s3220_s17, %s3273_s7 }
 0x18b   : > { %p1954_p13 = scmp.lt.u32.totalorder %s1952_s30, %s1948_s6  ;;  %p1956_p5 = scmp.lt.u32.totalorder %s1948_s6, %s3220_s17 }
 0x18c   : > { %p1950_p12 = pnand %p1949_p10, %p3368_p7 }
 0x18d   : > { %p1955_p0 = por %p1954_p13, %p1953_p1 }
 0x18e   : > { %p1951_p11 = pneg %p1950_p12 }
 0x18f   : > { %p1957_p9 = por %p1956_p5, %p1955_p0 }
 0x191   : > { %p1958_p8 = pnand %p1957_p9, %p1951_p11 }
 0x193   : > { %1961 = shalt.err (!%p1958_p8)
}
 0x194   : > { %s2031_s11 = smov 128   ;;  %s2032_s25 = smov 8  }
 0x195   : > { %1752 = dma.vmem_to_hbm [thread:$0]  (%p3368_p7), %s3222_s10, 384, %s3220_s17, %s1434_s9, %s2031_s11, %s2031_s11, %s2032_s25  }
 0x196 PF: > { %s1462_s23 = sand.u32 1, %s2008_s26   ;;  %p3369_p6 = scmp.ne.s32.totalorder %s3300_s18, 0 }
 0x197   : > { %p3370_p3 = scmp.ge.s32.totalorder %s2020_s29, 2  ;;  %s1463_s14 = scalar_lea.sflag [#allocation5], %s1462_s23 }
 0x199   : > { %p1775_p4 = pnand %p3370_p3, %p3369_p6 }
 0x19b   : > { %2003 = dma.done.wait (!%p1775_p4), %s1463_s14, 384  }
 0x19c   : > { %2005 = vsyncadd (!%p1775_p4), %s1463_s14, 4294966912  ;;  %p25_p2 = scmp.ge.s32.totalorder %s2177_s19, 4   ;;  %s3371_s26 = smov %s2012_s27 }
 0x19d   : > { %s3372_s27 = smov %s2016_s28  ;;  %s3373_s28 = smov %s2189_s8 }
 0x19e   : > { %s3374_s29 = smov %s2177_s19  ;;  %27 = sbr.rel (!%p25_p2) target bundleno = 11 (0xb), region = 115 }
 0x1a5   :  { %1468 = vsyncpa [#allocation4], 1 }
 0x1a6   :  { %1470 = vsyncpa [#allocation4 + $0x1], 1 }
 0x1a7   :  { %1471 = vsyncpa [#allocation5], 1 }
 0x1a8   :  { %1473 = vsyncpa [#allocation5 + $0x1], 1 }
 0x1a9   :  { %1474 = vsyncpa [#allocation6], 1 }
 0x1aa   :  { %1476 = vsyncpa [#allocation6 + $0x1], 1 }
 0x1ab   :  { %1477 = vsyncpa [#allocation7], 1 }
 0x1ac   :  { %1479 = vsyncpa [#allocation7 + $0x1], 1 }
 0x1ad   :  { %1480 = vsyncpa [#allocation10], 1 }
 0x1ae   :  { %1481 = vsyncpa [#allocation14], 1 }

</bundles_post_ra>
